<compile_context>
chip_gen: v6e
topology: v6e:2x2x1
jax: 0.10.0
libtpu: 0.0.40
codegen_flags: <defaults>
</compile_context>

<pallas_src>
import math
from functools import partial

import jax
import jax.numpy as jnp
from jax import lax
from jax.experimental import pallas as pl
from jax.experimental.pallas import tpu as pltpu


# ----------------------------- Pallas kernel -------------------------------

def _cross_block_kernel(q_ref, x_ref,
                        wq_ref, bq_ref, wkv_ref, bkv_ref,
                        wo_ref, bo_ref, g_ref, beta_ref,
                        o_ref, *, num_heads, d_k, ln_eps=1e-5):
    b_blk, S, C = q_ref.shape
    R = b_blk * S
    mm = wq_ref.dtype                            # matmul-operand dtype
    exact = jnp.dtype(mm) == jnp.dtype(jnp.float32)

    # Tokens arrive in the matmul dtype (halves DMA/transpose bytes on the fast
    # path); LN / softmax / residual math is done in f32.
    q_in = q_ref[...].reshape(R, C).astype(jnp.float32)   # kept for the residual
    x_in = x_ref[...].reshape(R, C).astype(jnp.float32)

    gamma = g_ref[...]
    beta = beta_ref[...]

    def layer_norm(t):                           # shared norm1 params, f32 math
        mu = jnp.mean(t, axis=-1, keepdims=True)
        var = jnp.mean((t - mu) * (t - mu), axis=-1, keepdims=True)
        return (t - mu) * lax.rsqrt(var + ln_eps) * gamma + beta

    qn = layer_norm(q_in).astype(mm)
    xn = layer_norm(x_in).astype(mm)

    # ---- projections: Q (1/sqrt(d_k) folded into wq/bq by the wrapper), fused K|V
    q = jnp.dot(qn, wq_ref[...], preferred_element_type=jnp.float32) + bq_ref[...]
    kv = jnp.dot(xn, wkv_ref[...], preferred_element_type=jnp.float32) + bkv_ref[...]
    qm = q.astype(mm)                            # [R, C]
    km = kv[:, :C].astype(mm)                    # [R, C]
    vm = kv[:, C:].astype(mm)                    # [R, C]

    # ---- per-(batch, head) attention.  Contract the last dims of both operands
    # (A @ B^T) on contiguous column slices of the [R, C] projections, so no
    # [h, S, d_k] relayout is ever materialized.  Per-head contexts are
    # concatenated in registers (lane axis) and fed straight into Wo — no narrow
    # d_k-wide scratch stores.
    nt_dims = (((1,), (1,)), ((), ()))
    ctx_rows = []
    for b in range(b_blk):
        r0 = b * S
        ctx_heads = []
        for h in range(num_heads):
            c0 = h * d_k
            q_bh = qm[r0:r0 + S, c0:c0 + d_k]    # [S, d_k]
            k_bh = km[r0:r0 + S, c0:c0 + d_k]
            v_bh = vm[r0:r0 + S, c0:c0 + d_k]
            s = lax.dot_general(q_bh, k_bh, nt_dims,
                                preferred_element_type=jnp.float32)       # [S, S]
            s_max = jnp.max(s, axis=-1, keepdims=True)
            e = jnp.exp(s - s_max)
            denom = jnp.sum(e, axis=-1, keepdims=True)
            ctx = jnp.dot(e.astype(mm), v_bh,
                          preferred_element_type=jnp.float32)             # [S, d_k]
            # normalize the small context instead of the [S, S] probabilities
            ctx = ctx * pl.reciprocal(denom, approx=not exact)
            ctx_heads.append(ctx.astype(mm))
        ctx_rows.append(jnp.concatenate(ctx_heads, axis=-1))              # [S, C]
    ctx_all = ctx_rows[0] if b_blk == 1 else jnp.concatenate(ctx_rows, axis=0)

    # ---- output projection + residual (residual uses the *un-normalized* query)
    out = jnp.dot(ctx_all, wo_ref[...],
                  preferred_element_type=jnp.float32) + bo_ref[...]
    out = out + q_in
    # o_ref is either [b_blk, S, C] or a lane-dense [b_blk, 1, S*C] slab.
    o_ref[...] = out.reshape(o_ref.shape).astype(o_ref.dtype)


# ------------------------------ JAX wrapper --------------------------------

def cross_transformer_block(query, x, params, num_heads, *,
                            batch_block=1, matmul_dtype=jnp.bfloat16):
    """query, x: [B, C, H, W] float32.  Returns [B, C, H, W].

    batch_block: batch elements per grid step.  At production sizes raise it
    until batch_block * H * W >= 256 (>=128 on v5e) to fill MXU rows, but keep
    B // batch_block >= 2 so the "parallel" grid axis feeds both v7x TensorCores.
    """
    B, C, H, W = x.shape
    S = H * W
    assert C % num_heads == 0
    d_k = C // num_heads
    assert B % batch_block == 0
    n_steps = B // batch_block

    wq, bq, wk, bk, wv, bv, wo, bo, gamma, beta = params
    scale = 1.0 / math.sqrt(d_k)

    # NCHW -> token-major [B, S, C]; tokens travel in the matmul dtype so the XLA
    # transposes and the per-step token DMAs move half the bytes on the bf16 fast
    # path (upcast to f32 inside the kernel for LN / residual).
    q_tok = query.astype(matmul_dtype).reshape(B, C, S).transpose(0, 2, 1)
    x_tok = x.astype(matmul_dtype).reshape(B, C, S).transpose(0, 2, 1)

    # Fold the attention scale into the Q projection; fuse K|V into one [C, 2C]
    # matmul.  bf16 operands run at full MXU rate on v5e/v6e/v7x alike (v5e only
    # lacks bf16 VPU/EUP, which is why all non-matmul math stays f32 in-kernel).
    wq_p = (wq * scale).astype(matmul_dtype)
    bq_p = (bq * scale).astype(jnp.float32)
    wkv_p = jnp.concatenate([wk, wv], axis=1).astype(matmul_dtype)
    bkv_p = jnp.concatenate([bk, bv], axis=1).astype(jnp.float32)
    wo_p = wo.astype(matmul_dtype)

    kernel = partial(_cross_block_kernel, num_heads=num_heads, d_k=d_k)

    tok_spec = pl.BlockSpec((batch_block, S, C), lambda i: (i, 0, 0))

    def const(shape):
        # Constant-index weight/bias/LN blocks: single pipeline buffer (default
        # double-buffering would duplicate ~4*C^2 weight elements in VMEM for
        # operands whose block index never changes).
        idx = lambda i: (0,) * len(shape)
        return pl.BlockSpec(shape, idx, pipeline_mode=pl.Buffered(1))

    in_specs = [
        tok_spec,                # query tokens
        tok_spec,                # x tokens
        const((C, C)),           # Wq^T (pre-scaled)
        const((1, C)),           # bq   (pre-scaled)
        const((C, 2 * C)),       # [Wk^T | Wv^T]
        const((1, 2 * C)),       # [bk | bv]
        const((C, C)),           # Wo^T
        const((1, C)),           # bo
        const((1, C)),           # LN gamma
        const((1, C)),           # LN beta
    ]

    mm_bytes = jnp.dtype(matmul_dtype).itemsize
    flops = int(2 * B * S * C * C            # Q projection
                + 2 * B * S * C * 2 * C      # fused K|V projection
                + 2 * B * S * S * C          # scores
                + 2 * B * S * S * C          # context
                + 2 * B * S * C * C          # output projection
                + 10 * B * S * C)            # LayerNorm + residual (rough)
    # Advisory estimate; the [S,S] score/prob term is VMEM traffic but is
    # included so XLA does not under-rank the kernel at large S.
    cost = pl.CostEstimate(
        flops=flops,
        transcendentals=int(B * num_heads * S * S + B * num_heads * S + 2 * B * S),
        bytes_accessed=int(2 * B * S * C * mm_bytes        # token blocks in
                           + B * S * C * 4                 # output
                           + 4 * C * C * mm_bytes + 6 * C * 4   # weights / biases
                           + 2 * B * num_heads * S * S * 4))    # scores / probs

    # Scoped-VMEM limit sized from the per-step working set (defaults: 16 MiB on
    # v5e, 32 MiB on v6e/v7x).  On v7x (64 MiB physical) the flash-tiled variant
    # (see TODO) is needed before the working set ever approaches the cap.
    per_step = (
        2 * 2 * batch_block * S * C * mm_bytes        # double-buffered q/x blocks
        + 2 * batch_block * S * C * 4                 # double-buffered out block
        + 4 * C * C * mm_bytes + 6 * C * 4            # single-buffered weights etc.
        + 3 * batch_block * S * C * 4                 # Q / K|V projections (f32)
        + 4 * batch_block * S * C * 4                 # LN temps / ctx / residual
        + 3 * S * S * 4)                              # live scores + exp per head
    vmem_limit = int(min(max(2 * per_step, 32 << 20), 100 << 20))

    cparams = pltpu.CompilerParams(
        dimension_semantics=("parallel",),
        vmem_limit_bytes=vmem_limit)

    def run(flatten_out):
        if flatten_out:
            out_shape = jax.ShapeDtypeStruct((B, 1, S * C), query.dtype)
            out_spec = pl.BlockSpec((batch_block, 1, S * C), lambda i: (i, 0, 0))
        else:
            out_shape = jax.ShapeDtypeStruct((B, S, C), query.dtype)
            out_spec = tok_spec
        out = pl.pallas_call(
            kernel,
            out_shape=out_shape,
            grid_spec=pltpu.PrefetchScalarGridSpec(
                num_scalar_prefetch=0,
                grid=(n_steps,),
                in_specs=in_specs,
                out_specs=out_spec),
            compiler_params=cparams,
            cost_estimate=cost,
        )(q_tok, x_tok, wq_p, bq_p, wkv_p, bkv_p, wo_p, bo, gamma, beta)
        return out.reshape(B, S, C) if flatten_out else out

    if C % 128 != 0:
        # Lane-dense output: a [*, S, C] store with C below / not a multiple of
        # 128 lowers to masked partial stores; a [*, 1, S*C] slab gets unmasked
        # 128-lane vst (biggest measured store-side lever, esp. v5e's single vst
        # slot).  The in-register (S, C) -> (S*C,) flatten needs Mosaic relayout
        # support, so fall back to the channel-tiled store if it cannot lower.
        try:
            out_tok = run(flatten_out=True)
        except Exception:  # pragma: no cover - depends on Mosaic reshape support
            out_tok = run(flatten_out=False)
    else:
        out_tok = run(flatten_out=False)

    # [B, S, C] -> NCHW
    return out_tok.transpose(0, 2, 1).reshape(B, C, H, W)


def init_params(key, C):
    """Deterministic parameter init (nn.Linear-like uniform, LN gamma=1, beta=0).
    Linear weights are stored pre-transposed as [C_in, C_out]."""
    keys = jax.random.split(key, 8)
    bound = 1.0 / math.sqrt(C)

    def lin(kw, kb):
        w_t = jax.random.uniform(kw, (C, C), jnp.float32, -bound, bound)
        b = jax.random.uniform(kb, (1, C), jnp.float32, -bound, bound)
        return w_t, b

    wq, bq = lin(keys[0], keys[1])
    wk, bk = lin(keys[2], keys[3])
    wv, bv = lin(keys[4], keys[5])
    wo, bo = lin(keys[6], keys[7])
    gamma = jnp.ones((1, C), jnp.float32)
    beta = jnp.zeros((1, C), jnp.float32)
    return (wq, bq, wk, bk, wv, bv, wo, bo, gamma, beta)


# ------------------------- pure-JAX reference check -------------------------

def _reference(query, x, params, num_heads):
    B, C, H, W = x.shape
    S = H * W
    d_k = C // num_heads
    wq, bq, wk, bk, wv, bv, wo, bo, gamma, beta = params
    q_tok = query.reshape(B, C, S).transpose(0, 2, 1)
    x_tok = x.reshape(B, C, S).transpose(0, 2, 1)

    def ln(t):
        mu = jnp.mean(t, -1, keepdims=True)
        var = jnp.mean((t - mu) ** 2, -1, keepdims=True)
        return (t - mu) / jnp.sqrt(var + 1e-5) * gamma + beta

    qn, xn = ln(q_tok), ln(x_tok)
    q = qn @ wq + bq
    k = xn @ wk + bk
    v = xn @ wv + bv
    q = q.reshape(B, S, num_heads, d_k).transpose(0, 2, 1, 3)
    k = k.reshape(B, S, num_heads, d_k).transpose(0, 2, 1, 3)
    v = v.reshape(B, S, num_heads, d_k).transpose(0, 2, 1, 3)
    scores = jnp.einsum('bhsd,bhtd->bhst', q, k) / math.sqrt(d_k)
    p = jax.nn.softmax(scores, axis=-1)
    ctx = jnp.einsum('bhst,bhtd->bhsd', p, v)
    ctx = ctx.transpose(0, 2, 1, 3).reshape(B, S, C)
    out = ctx @ wo + bo + q_tok
    return out.transpose(0, 2, 1).reshape(B, C, H, W)


if __name__ == "__main__":
    B, C, H, W = 2, 32, 8, 8
    num_heads = 4

    key = jax.random.PRNGKey(0)
    k_q, k_x, k_p = jax.random.split(key, 3)
    query = jax.random.normal(k_q, (B, C, H, W), jnp.float32)
    x = jax.random.normal(k_x, (B, C, H, W), jnp.float32)
    params = init_params(k_p, C)

    ref = _reference(query, x, params, num_heads)

    # Exact path (f32 MXU operands, exact reciprocal, f32 tokens): tight check.
    out_f32 = jax.block_until_ready(
        cross_transformer_block(query, x, params, num_heads,
                                matmul_dtype=jnp.float32))
    assert out_f32.shape == (B, C, H, W)
    assert jnp.allclose(out_f32, ref, atol=1e-4, rtol=1e-4), "f32 path mismatch"

    # Default fast path (bf16 MXU operands + tokens, approx recip, f32 accumulate).
    out_fast = jax.block_until_ready(
        cross_transformer_block(query, x, params, num_heads))
    assert out_fast.shape == (B, C, H, W)
    assert jnp.allclose(out_fast.astype(jnp.float32), ref,
                        atol=5e-2, rtol=5e-2), "bf16 fast path mismatch"

    print("KERNEL_OK")
</pallas_src>

<mosaic_0001>
module attributes {stable_mosaic.version = 11 : i64} {
  func.func @_cross_block_kernel(%arg0: i32, %arg1: memref<1x64x32xf32, #tpu.memory_space<vmem>>, %arg2: memref<1x64x32xf32, #tpu.memory_space<vmem>>, %arg3: memref<32x32xf32, #tpu.memory_space<vmem>>, %arg4: memref<1x32xf32, #tpu.memory_space<vmem>>, %arg5: memref<32x64xf32, #tpu.memory_space<vmem>>, %arg6: memref<1x64xf32, #tpu.memory_space<vmem>>, %arg7: memref<32x32xf32, #tpu.memory_space<vmem>>, %arg8: memref<1x32xf32, #tpu.memory_space<vmem>>, %arg9: memref<1x32xf32, #tpu.memory_space<vmem>>, %arg10: memref<1x32xf32, #tpu.memory_space<vmem>>, %arg11: memref<1x1x2048xf32, #tpu.memory_space<vmem>>) attributes {dimension_semantics = [#tpu.dimension_semantics<parallel>], iteration_bounds = array<i64: 2>, scalar_prefetch = 0 : i64, scratch_operands = 0 : i64, tpu.core_type = #tpu.core_type<tc>, window_params = [{transform_indices = @transform_0, window_bounds = array<i64: 1, 64, 32>}, {transform_indices = @transform_1, window_bounds = array<i64: 1, 64, 32>}, {pipeline_mode = #tpu.pipeline_mode<synchronous>, transform_indices = @transform_2, window_bounds = array<i64: 32, 32>}, {pipeline_mode = #tpu.pipeline_mode<synchronous>, transform_indices = @transform_3, window_bounds = array<i64: 1, 32>}, {pipeline_mode = #tpu.pipeline_mode<synchronous>, transform_indices = @transform_4, window_bounds = array<i64: 32, 64>}, {pipeline_mode = #tpu.pipeline_mode<synchronous>, transform_indices = @transform_5, window_bounds = array<i64: 1, 64>}, {pipeline_mode = #tpu.pipeline_mode<synchronous>, transform_indices = @transform_6, window_bounds = array<i64: 32, 32>}, {pipeline_mode = #tpu.pipeline_mode<synchronous>, transform_indices = @transform_7, window_bounds = array<i64: 1, 32>}, {pipeline_mode = #tpu.pipeline_mode<synchronous>, transform_indices = @transform_8, window_bounds = array<i64: 1, 32>}, {pipeline_mode = #tpu.pipeline_mode<synchronous>, transform_indices = @transform_9, window_bounds = array<i64: 1, 32>}, {transform_indices = @transform_10, window_bounds = array<i64: 1, 1, 2048>}]} {
    %c0 = arith.constant 0 : index
    %c0_0 = arith.constant 0 : index
    %c0_1 = arith.constant 0 : index
    %0 = vector.load %arg1[%c0, %c0_0, %c0_1] : memref<1x64x32xf32, #tpu.memory_space<vmem>>, vector<1x64x32xf32>
    %1 = vector.shape_cast %0 : vector<1x64x32xf32> to vector<64x32xf32>
    %c0_2 = arith.constant 0 : index
    %c0_3 = arith.constant 0 : index
    %c0_4 = arith.constant 0 : index
    %2 = vector.load %arg2[%c0_2, %c0_3, %c0_4] : memref<1x64x32xf32, #tpu.memory_space<vmem>>, vector<1x64x32xf32>
    %3 = vector.shape_cast %2 : vector<1x64x32xf32> to vector<64x32xf32>
    %c0_5 = arith.constant 0 : index
    %c0_6 = arith.constant 0 : index
    %4 = vector.load %arg9[%c0_5, %c0_6] : memref<1x32xf32, #tpu.memory_space<vmem>>, vector<1x32xf32>
    %c0_7 = arith.constant 0 : index
    %c0_8 = arith.constant 0 : index
    %5 = vector.load %arg10[%c0_7, %c0_8] : memref<1x32xf32, #tpu.memory_space<vmem>>, vector<1x32xf32>
    %cst = arith.constant dense<0.000000e+00> : vector<64xf32>
    %6 = vector.multi_reduction <add>, %1, %cst [1] : vector<64x32xf32> to vector<64xf32>
    %7 = vector.shape_cast %6 : vector<64xf32> to vector<64x1xf32>
    %cst_9 = arith.constant 3.200000e+01 : f32
    %8 = vector.broadcast %cst_9 : f32 to vector<64x1xf32>
    %9 = arith.divf %7, %8 : vector<64x1xf32>
    %10 = vector.broadcast %9 : vector<64x1xf32> to vector<64x32xf32>
    %11 = arith.subf %1, %10 : vector<64x32xf32>
    %12 = vector.broadcast %9 : vector<64x1xf32> to vector<64x32xf32>
    %13 = arith.subf %1, %12 : vector<64x32xf32>
    %14 = arith.mulf %11, %13 : vector<64x32xf32>
    %cst_10 = arith.constant dense<0.000000e+00> : vector<64xf32>
    %15 = vector.multi_reduction <add>, %14, %cst_10 [1] : vector<64x32xf32> to vector<64xf32>
    %16 = vector.shape_cast %15 : vector<64xf32> to vector<64x1xf32>
    %cst_11 = arith.constant 3.200000e+01 : f32
    %17 = vector.broadcast %cst_11 : f32 to vector<64x1xf32>
    %18 = arith.divf %16, %17 : vector<64x1xf32>
    %19 = vector.broadcast %9 : vector<64x1xf32> to vector<64x32xf32>
    %20 = arith.subf %1, %19 : vector<64x32xf32>
    %cst_12 = arith.constant 9.99999974E-6 : f32
    %21 = vector.broadcast %cst_12 : f32 to vector<64x1xf32>
    %22 = arith.addf %18, %21 : vector<64x1xf32>
    %23 = math.rsqrt %22 : vector<64x1xf32>
    %24 = vector.broadcast %23 : vector<64x1xf32> to vector<64x32xf32>
    %25 = arith.mulf %20, %24 : vector<64x32xf32>
    %26 = vector.broadcast %4 : vector<1x32xf32> to vector<64x32xf32>
    %27 = arith.mulf %25, %26 : vector<64x32xf32>
    %28 = vector.broadcast %5 : vector<1x32xf32> to vector<64x32xf32>
    %29 = arith.addf %27, %28 : vector<64x32xf32>
    %cst_13 = arith.constant dense<0.000000e+00> : vector<64xf32>
    %30 = vector.multi_reduction <add>, %3, %cst_13 [1] : vector<64x32xf32> to vector<64xf32>
    %31 = vector.shape_cast %30 : vector<64xf32> to vector<64x1xf32>
    %cst_14 = arith.constant 3.200000e+01 : f32
    %32 = vector.broadcast %cst_14 : f32 to vector<64x1xf32>
    %33 = arith.divf %31, %32 : vector<64x1xf32>
    %34 = vector.broadcast %33 : vector<64x1xf32> to vector<64x32xf32>
    %35 = arith.subf %3, %34 : vector<64x32xf32>
    %36 = vector.broadcast %33 : vector<64x1xf32> to vector<64x32xf32>
    %37 = arith.subf %3, %36 : vector<64x32xf32>
    %38 = arith.mulf %35, %37 : vector<64x32xf32>
    %cst_15 = arith.constant dense<0.000000e+00> : vector<64xf32>
    %39 = vector.multi_reduction <add>, %38, %cst_15 [1] : vector<64x32xf32> to vector<64xf32>
    %40 = vector.shape_cast %39 : vector<64xf32> to vector<64x1xf32>
    %cst_16 = arith.constant 3.200000e+01 : f32
    %41 = vector.broadcast %cst_16 : f32 to vector<64x1xf32>
    %42 = arith.divf %40, %41 : vector<64x1xf32>
    %43 = vector.broadcast %33 : vector<64x1xf32> to vector<64x32xf32>
    %44 = arith.subf %3, %43 : vector<64x32xf32>
    %cst_17 = arith.constant 9.99999974E-6 : f32
    %45 = vector.broadcast %cst_17 : f32 to vector<64x1xf32>
    %46 = arith.addf %42, %45 : vector<64x1xf32>
    %47 = math.rsqrt %46 : vector<64x1xf32>
    %48 = vector.broadcast %47 : vector<64x1xf32> to vector<64x32xf32>
    %49 = arith.mulf %44, %48 : vector<64x32xf32>
    %50 = vector.broadcast %4 : vector<1x32xf32> to vector<64x32xf32>
    %51 = arith.mulf %49, %50 : vector<64x32xf32>
    %52 = vector.broadcast %5 : vector<1x32xf32> to vector<64x32xf32>
    %53 = arith.addf %51, %52 : vector<64x32xf32>
    %c0_18 = arith.constant 0 : index
    %c0_19 = arith.constant 0 : index
    %54 = vector.load %arg3[%c0_18, %c0_19] : memref<32x32xf32, #tpu.memory_space<vmem>>, vector<32x32xf32>
    %cst_20 = arith.constant dense<0.000000e+00> : vector<64x32xf32>
    %55 = tpu.matmul %29, %54, %cst_20 {dimension_numbers = #tpu.dot_dimension_numbers<[1], [0], [0], [1], [0, 0, 1, 1], [], []>} : vector<64x32xf32>, vector<32x32xf32>, vector<64x32xf32> -> vector<64x32xf32>
    %c0_21 = arith.constant 0 : index
    %c0_22 = arith.constant 0 : index
    %56 = vector.load %arg4[%c0_21, %c0_22] : memref<1x32xf32, #tpu.memory_space<vmem>>, vector<1x32xf32>
    %57 = vector.broadcast %56 : vector<1x32xf32> to vector<64x32xf32>
    %58 = arith.addf %55, %57 : vector<64x32xf32>
    %c0_23 = arith.constant 0 : index
    %c0_24 = arith.constant 0 : index
    %59 = vector.load %arg5[%c0_23, %c0_24] : memref<32x64xf32, #tpu.memory_space<vmem>>, vector<32x64xf32>
    %cst_25 = arith.constant dense<0.000000e+00> : vector<64x64xf32>
    %60 = tpu.matmul %53, %59, %cst_25 {dimension_numbers = #tpu.dot_dimension_numbers<[1], [0], [0], [1], [0, 0, 1, 1], [], []>} : vector<64x32xf32>, vector<32x64xf32>, vector<64x64xf32> -> vector<64x64xf32>
    %c0_26 = arith.constant 0 : index
    %c0_27 = arith.constant 0 : index
    %61 = vector.load %arg6[%c0_26, %c0_27] : memref<1x64xf32, #tpu.memory_space<vmem>>, vector<1x64xf32>
    %62 = vector.broadcast %61 : vector<1x64xf32> to vector<64x64xf32>
    %63 = arith.addf %60, %62 : vector<64x64xf32>
    %64 = vector.extract_strided_slice %63 {offsets = [0, 0], sizes = [64, 32], strides = [1, 1]} : vector<64x64xf32> to vector<64x32xf32>
    %65 = vector.extract_strided_slice %63 {offsets = [0, 32], sizes = [64, 32], strides = [1, 1]} : vector<64x64xf32> to vector<64x32xf32>
    %66 = vector.extract_strided_slice %58 {offsets = [0, 0], sizes = [64, 8], strides = [1, 1]} : vector<64x32xf32> to vector<64x8xf32>
    %67 = vector.extract_strided_slice %64 {offsets = [0, 0], sizes = [64, 8], strides = [1, 1]} : vector<64x32xf32> to vector<64x8xf32>
    %68 = vector.extract_strided_slice %65 {offsets = [0, 0], sizes = [64, 8], strides = [1, 1]} : vector<64x32xf32> to vector<64x8xf32>
    %cst_28 = arith.constant dense<0.000000e+00> : vector<64x64xf32>
    %69 = tpu.matmul %66, %67, %cst_28 {dimension_numbers = #tpu.dot_dimension_numbers<[1], [1], [0], [0], [0, 0, 1, 0], [], []>} : vector<64x8xf32>, vector<64x8xf32>, vector<64x64xf32> -> vector<64x64xf32>
    %cst_29 = arith.constant dense<0xFF800000> : vector<64xf32>
    %70 = vector.multi_reduction <maximumf>, %69, %cst_29 [1] : vector<64x64xf32> to vector<64xf32>
    %71 = vector.shape_cast %70 : vector<64xf32> to vector<64x1xf32>
    %72 = vector.broadcast %71 : vector<64x1xf32> to vector<64x64xf32>
    %73 = arith.subf %69, %72 : vector<64x64xf32>
    %74 = math.exp %73 : vector<64x64xf32>
    %cst_30 = arith.constant dense<0.000000e+00> : vector<64xf32>
    %75 = vector.multi_reduction <add>, %74, %cst_30 [1] : vector<64x64xf32> to vector<64xf32>
    %76 = vector.shape_cast %75 : vector<64xf32> to vector<64x1xf32>
    %cst_31 = arith.constant dense<0.000000e+00> : vector<64x8xf32>
    %77 = tpu.matmul %74, %68, %cst_31 {dimension_numbers = #tpu.dot_dimension_numbers<[1], [0], [0], [1], [0, 0, 1, 1], [], []>} : vector<64x64xf32>, vector<64x8xf32>, vector<64x8xf32> -> vector<64x8xf32>
    %78 = tpu.reciprocal %76 : vector<64x1xf32> -> vector<64x1xf32>
    %79 = vector.broadcast %78 : vector<64x1xf32> to vector<64x8xf32>
    %80 = arith.mulf %77, %79 : vector<64x8xf32>
    %81 = vector.extract_strided_slice %58 {offsets = [0, 8], sizes = [64, 8], strides = [1, 1]} : vector<64x32xf32> to vector<64x8xf32>
    %82 = vector.extract_strided_slice %64 {offsets = [0, 8], sizes = [64, 8], strides = [1, 1]} : vector<64x32xf32> to vector<64x8xf32>
    %83 = vector.extract_strided_slice %65 {offsets = [0, 8], sizes = [64, 8], strides = [1, 1]} : vector<64x32xf32> to vector<64x8xf32>
    %cst_32 = arith.constant dense<0.000000e+00> : vector<64x64xf32>
    %84 = tpu.matmul %81, %82, %cst_32 {dimension_numbers = #tpu.dot_dimension_numbers<[1], [1], [0], [0], [0, 0, 1, 0], [], []>} : vector<64x8xf32>, vector<64x8xf32>, vector<64x64xf32> -> vector<64x64xf32>
    %cst_33 = arith.constant dense<0xFF800000> : vector<64xf32>
    %85 = vector.multi_reduction <maximumf>, %84, %cst_33 [1] : vector<64x64xf32> to vector<64xf32>
    %86 = vector.shape_cast %85 : vector<64xf32> to vector<64x1xf32>
    %87 = vector.broadcast %86 : vector<64x1xf32> to vector<64x64xf32>
    %88 = arith.subf %84, %87 : vector<64x64xf32>
    %89 = math.exp %88 : vector<64x64xf32>
    %cst_34 = arith.constant dense<0.000000e+00> : vector<64xf32>
    %90 = vector.multi_reduction <add>, %89, %cst_34 [1] : vector<64x64xf32> to vector<64xf32>
    %91 = vector.shape_cast %90 : vector<64xf32> to vector<64x1xf32>
    %cst_35 = arith.constant dense<0.000000e+00> : vector<64x8xf32>
    %92 = tpu.matmul %89, %83, %cst_35 {dimension_numbers = #tpu.dot_dimension_numbers<[1], [0], [0], [1], [0, 0, 1, 1], [], []>} : vector<64x64xf32>, vector<64x8xf32>, vector<64x8xf32> -> vector<64x8xf32>
    %93 = tpu.reciprocal %91 : vector<64x1xf32> -> vector<64x1xf32>
    %94 = vector.broadcast %93 : vector<64x1xf32> to vector<64x8xf32>
    %95 = arith.mulf %92, %94 : vector<64x8xf32>
    %96 = vector.extract_strided_slice %58 {offsets = [0, 16], sizes = [64, 8], strides = [1, 1]} : vector<64x32xf32> to vector<64x8xf32>
    %97 = vector.extract_strided_slice %64 {offsets = [0, 16], sizes = [64, 8], strides = [1, 1]} : vector<64x32xf32> to vector<64x8xf32>
    %98 = vector.extract_strided_slice %65 {offsets = [0, 16], sizes = [64, 8], strides = [1, 1]} : vector<64x32xf32> to vector<64x8xf32>
    %cst_36 = arith.constant dense<0.000000e+00> : vector<64x64xf32>
    %99 = tpu.matmul %96, %97, %cst_36 {dimension_numbers = #tpu.dot_dimension_numbers<[1], [1], [0], [0], [0, 0, 1, 0], [], []>} : vector<64x8xf32>, vector<64x8xf32>, vector<64x64xf32> -> vector<64x64xf32>
    %cst_37 = arith.constant dense<0xFF800000> : vector<64xf32>
    %100 = vector.multi_reduction <maximumf>, %99, %cst_37 [1] : vector<64x64xf32> to vector<64xf32>
    %101 = vector.shape_cast %100 : vector<64xf32> to vector<64x1xf32>
    %102 = vector.broadcast %101 : vector<64x1xf32> to vector<64x64xf32>
    %103 = arith.subf %99, %102 : vector<64x64xf32>
    %104 = math.exp %103 : vector<64x64xf32>
    %cst_38 = arith.constant dense<0.000000e+00> : vector<64xf32>
    %105 = vector.multi_reduction <add>, %104, %cst_38 [1] : vector<64x64xf32> to vector<64xf32>
    %106 = vector.shape_cast %105 : vector<64xf32> to vector<64x1xf32>
    %cst_39 = arith.constant dense<0.000000e+00> : vector<64x8xf32>
    %107 = tpu.matmul %104, %98, %cst_39 {dimension_numbers = #tpu.dot_dimension_numbers<[1], [0], [0], [1], [0, 0, 1, 1], [], []>} : vector<64x64xf32>, vector<64x8xf32>, vector<64x8xf32> -> vector<64x8xf32>
    %108 = tpu.reciprocal %106 : vector<64x1xf32> -> vector<64x1xf32>
    %109 = vector.broadcast %108 : vector<64x1xf32> to vector<64x8xf32>
    %110 = arith.mulf %107, %109 : vector<64x8xf32>
    %111 = vector.extract_strided_slice %58 {offsets = [0, 24], sizes = [64, 8], strides = [1, 1]} : vector<64x32xf32> to vector<64x8xf32>
    %112 = vector.extract_strided_slice %64 {offsets = [0, 24], sizes = [64, 8], strides = [1, 1]} : vector<64x32xf32> to vector<64x8xf32>
    %113 = vector.extract_strided_slice %65 {offsets = [0, 24], sizes = [64, 8], strides = [1, 1]} : vector<64x32xf32> to vector<64x8xf32>
    %cst_40 = arith.constant dense<0.000000e+00> : vector<64x64xf32>
    %114 = tpu.matmul %111, %112, %cst_40 {dimension_numbers = #tpu.dot_dimension_numbers<[1], [1], [0], [0], [0, 0, 1, 0], [], []>} : vector<64x8xf32>, vector<64x8xf32>, vector<64x64xf32> -> vector<64x64xf32>
    %cst_41 = arith.constant dense<0xFF800000> : vector<64xf32>
    %115 = vector.multi_reduction <maximumf>, %114, %cst_41 [1] : vector<64x64xf32> to vector<64xf32>
    %116 = vector.shape_cast %115 : vector<64xf32> to vector<64x1xf32>
    %117 = vector.broadcast %116 : vector<64x1xf32> to vector<64x64xf32>
    %118 = arith.subf %114, %117 : vector<64x64xf32>
    %119 = math.exp %118 : vector<64x64xf32>
    %cst_42 = arith.constant dense<0.000000e+00> : vector<64xf32>
    %120 = vector.multi_reduction <add>, %119, %cst_42 [1] : vector<64x64xf32> to vector<64xf32>
    %121 = vector.shape_cast %120 : vector<64xf32> to vector<64x1xf32>
    %cst_43 = arith.constant dense<0.000000e+00> : vector<64x8xf32>
    %122 = tpu.matmul %119, %113, %cst_43 {dimension_numbers = #tpu.dot_dimension_numbers<[1], [0], [0], [1], [0, 0, 1, 1], [], []>} : vector<64x64xf32>, vector<64x8xf32>, vector<64x8xf32> -> vector<64x8xf32>
    %123 = tpu.reciprocal %121 : vector<64x1xf32> -> vector<64x1xf32>
    %124 = vector.broadcast %123 : vector<64x1xf32> to vector<64x8xf32>
    %125 = arith.mulf %122, %124 : vector<64x8xf32>
    %126 = tpu.concatenate %80, %95, %110, %125 in 1 : vector<64x8xf32>, vector<64x8xf32>, vector<64x8xf32>, vector<64x8xf32> -> vector<64x32xf32>
    %c0_44 = arith.constant 0 : index
    %c0_45 = arith.constant 0 : index
    %127 = vector.load %arg7[%c0_44, %c0_45] : memref<32x32xf32, #tpu.memory_space<vmem>>, vector<32x32xf32>
    %cst_46 = arith.constant dense<0.000000e+00> : vector<64x32xf32>
    %128 = tpu.matmul %126, %127, %cst_46 {dimension_numbers = #tpu.dot_dimension_numbers<[1], [0], [0], [1], [0, 0, 1, 1], [], []>} : vector<64x32xf32>, vector<32x32xf32>, vector<64x32xf32> -> vector<64x32xf32>
    %c0_47 = arith.constant 0 : index
    %c0_48 = arith.constant 0 : index
    %129 = vector.load %arg8[%c0_47, %c0_48] : memref<1x32xf32, #tpu.memory_space<vmem>>, vector<1x32xf32>
    %130 = vector.broadcast %129 : vector<1x32xf32> to vector<64x32xf32>
    %131 = arith.addf %128, %130 : vector<64x32xf32>
    %132 = arith.addf %131, %1 : vector<64x32xf32>
    %133 = vector.shape_cast %132 : vector<64x32xf32> to vector<1x1x2048xf32>
    %c0_49 = arith.constant 0 : index
    %c0_50 = arith.constant 0 : index
    %c0_51 = arith.constant 0 : index
    %134 = vector.load %arg11[%c0_49, %c0_50, %c0_51] : memref<1x1x2048xf32, #tpu.memory_space<vmem>>, vector<1x1x2048xf32>
    tpu.vector_store %arg11[%c0_49, %c0_50, %c0_51], %133 {strides = array<i32>} : memref<1x1x2048xf32, #tpu.memory_space<vmem>>, vector<1x1x2048xf32>,
    return
  }
  func.func @transform_0(%arg0: i32) -> (i32, i32, i32) {
    %c0_i32 = arith.constant 0 : i32
    %c0_i32_0 = arith.constant 0 : i32
    %c0_i32_1 = arith.constant 0 : i32
    return %arg0, %c0_i32, %c0_i32_0 : i32, i32, i32
  }
  func.func @transform_1(%arg0: i32) -> (i32, i32, i32) {
    %c0_i32 = arith.constant 0 : i32
    %c0_i32_0 = arith.constant 0 : i32
    %c0_i32_1 = arith.constant 0 : i32
    return %arg0, %c0_i32, %c0_i32_0 : i32, i32, i32
  }
  func.func @transform_2(%arg0: i32) -> (i32, i32) {
    %c0_i32 = arith.constant 0 : i32
    %c0_i32_0 = arith.constant 0 : i32
    %c0_i32_1 = arith.constant 0 : i32
    return %c0_i32, %c0_i32_0 : i32, i32
  }
  func.func @transform_3(%arg0: i32) -> (i32, i32) {
    %c0_i32 = arith.constant 0 : i32
    %c0_i32_0 = arith.constant 0 : i32
    %c0_i32_1 = arith.constant 0 : i32
    return %c0_i32, %c0_i32_0 : i32, i32
  }
  func.func @transform_4(%arg0: i32) -> (i32, i32) {
    %c0_i32 = arith.constant 0 : i32
    %c0_i32_0 = arith.constant 0 : i32
    %c0_i32_1 = arith.constant 0 : i32
    return %c0_i32, %c0_i32_0 : i32, i32
  }
  func.func @transform_5(%arg0: i32) -> (i32, i32) {
    %c0_i32 = arith.constant 0 : i32
    %c0_i32_0 = arith.constant 0 : i32
    %c0_i32_1 = arith.constant 0 : i32
    return %c0_i32, %c0_i32_0 : i32, i32
  }
  func.func @transform_6(%arg0: i32) -> (i32, i32) {
    %c0_i32 = arith.constant 0 : i32
    %c0_i32_0 = arith.constant 0 : i32
    %c0_i32_1 = arith.constant 0 : i32
    return %c0_i32, %c0_i32_0 : i32, i32
  }
  func.func @transform_7(%arg0: i32) -> (i32, i32) {
    %c0_i32 = arith.constant 0 : i32
    %c0_i32_0 = arith.constant 0 : i32
    %c0_i32_1 = arith.constant 0 : i32
    return %c0_i32, %c0_i32_0 : i32, i32
  }
  func.func @transform_8(%arg0: i32) -> (i32, i32) {
    %c0_i32 = arith.constant 0 : i32
    %c0_i32_0 = arith.constant 0 : i32
    %c0_i32_1 = arith.constant 0 : i32
    return %c0_i32, %c0_i32_0 : i32, i32
  }
  func.func @transform_9(%arg0: i32) -> (i32, i32) {
    %c0_i32 = arith.constant 0 : i32
    %c0_i32_0 = arith.constant 0 : i32
    %c0_i32_1 = arith.constant 0 : i32
    return %c0_i32, %c0_i32_0 : i32, i32
  }
  func.func @transform_10(%arg0: i32) -> (i32, i32, i32) {
    %c0_i32 = arith.constant 0 : i32
    %c0_i32_0 = arith.constant 0 : i32
    %c0_i32_1 = arith.constant 0 : i32
    return %arg0, %c0_i32, %c0_i32_0 : i32, i32, i32
  }
}

module attributes {stable_mosaic.version = 11 : i64} {
  func.func @_cross_block_kernel(%arg0: i32, %arg1: memref<1x64x32xf32, #tpu.memory_space<vmem>>, %arg2: memref<1x64x32xf32, #tpu.memory_space<vmem>>, %arg3: memref<32x32xf32, #tpu.memory_space<vmem>>, %arg4: memref<1x32xf32, #tpu.memory_space<vmem>>, %arg5: memref<32x64xf32, #tpu.memory_space<vmem>>, %arg6: memref<1x64xf32, #tpu.memory_space<vmem>>, %arg7: memref<32x32xf32, #tpu.memory_space<vmem>>, %arg8: memref<1x32xf32, #tpu.memory_space<vmem>>, %arg9: memref<1x32xf32, #tpu.memory_space<vmem>>, %arg10: memref<1x32xf32, #tpu.memory_space<vmem>>, %arg11: memref<1x64x32xf32, #tpu.memory_space<vmem>>) attributes {dimension_semantics = [#tpu.dimension_semantics<parallel>], iteration_bounds = array<i64: 2>, scalar_prefetch = 0 : i64, scratch_operands = 0 : i64, tpu.core_type = #tpu.core_type<tc>, window_params = [{transform_indices = @transform_0, window_bounds = array<i64: 1, 64, 32>}, {transform_indices = @transform_1, window_bounds = array<i64: 1, 64, 32>}, {pipeline_mode = #tpu.pipeline_mode<synchronous>, transform_indices = @transform_2, window_bounds = array<i64: 32, 32>}, {pipeline_mode = #tpu.pipeline_mode<synchronous>, transform_indices = @transform_3, window_bounds = array<i64: 1, 32>}, {pipeline_mode = #tpu.pipeline_mode<synchronous>, transform_indices = @transform_4, window_bounds = array<i64: 32, 64>}, {pipeline_mode = #tpu.pipeline_mode<synchronous>, transform_indices = @transform_5, window_bounds = array<i64: 1, 64>}, {pipeline_mode = #tpu.pipeline_mode<synchronous>, transform_indices = @transform_6, window_bounds = array<i64: 32, 32>}, {pipeline_mode = #tpu.pipeline_mode<synchronous>, transform_indices = @transform_7, window_bounds = array<i64: 1, 32>}, {pipeline_mode = #tpu.pipeline_mode<synchronous>, transform_indices = @transform_8, window_bounds = array<i64: 1, 32>}, {pipeline_mode = #tpu.pipeline_mode<synchronous>, transform_indices = @transform_9, window_bounds = array<i64: 1, 32>}, {transform_indices = @transform_10, window_bounds = array<i64: 1, 64, 32>}]} {
    %c0 = arith.constant 0 : index
    %c0_0 = arith.constant 0 : index
    %c0_1 = arith.constant 0 : index
    %0 = vector.load %arg1[%c0, %c0_0, %c0_1] : memref<1x64x32xf32, #tpu.memory_space<vmem>>, vector<1x64x32xf32>
    %1 = vector.shape_cast %0 : vector<1x64x32xf32> to vector<64x32xf32>
    %c0_2 = arith.constant 0 : index
    %c0_3 = arith.constant 0 : index
    %c0_4 = arith.constant 0 : index
    %2 = vector.load %arg2[%c0_2, %c0_3, %c0_4] : memref<1x64x32xf32, #tpu.memory_space<vmem>>, vector<1x64x32xf32>
    %3 = vector.shape_cast %2 : vector<1x64x32xf32> to vector<64x32xf32>
    %c0_5 = arith.constant 0 : index
    %c0_6 = arith.constant 0 : index
    %4 = vector.load %arg9[%c0_5, %c0_6] : memref<1x32xf32, #tpu.memory_space<vmem>>, vector<1x32xf32>
    %c0_7 = arith.constant 0 : index
    %c0_8 = arith.constant 0 : index
    %5 = vector.load %arg10[%c0_7, %c0_8] : memref<1x32xf32, #tpu.memory_space<vmem>>, vector<1x32xf32>
    %cst = arith.constant dense<0.000000e+00> : vector<64xf32>
    %6 = vector.multi_reduction <add>, %1, %cst [1] : vector<64x32xf32> to vector<64xf32>
    %7 = vector.shape_cast %6 : vector<64xf32> to vector<64x1xf32>
    %cst_9 = arith.constant 3.200000e+01 : f32
    %8 = vector.broadcast %cst_9 : f32 to vector<64x1xf32>
    %9 = arith.divf %7, %8 : vector<64x1xf32>
    %10 = vector.broadcast %9 : vector<64x1xf32> to vector<64x32xf32>
    %11 = arith.subf %1, %10 : vector<64x32xf32>
    %12 = vector.broadcast %9 : vector<64x1xf32> to vector<64x32xf32>
    %13 = arith.subf %1, %12 : vector<64x32xf32>
    %14 = arith.mulf %11, %13 : vector<64x32xf32>
    %cst_10 = arith.constant dense<0.000000e+00> : vector<64xf32>
    %15 = vector.multi_reduction <add>, %14, %cst_10 [1] : vector<64x32xf32> to vector<64xf32>
    %16 = vector.shape_cast %15 : vector<64xf32> to vector<64x1xf32>
    %cst_11 = arith.constant 3.200000e+01 : f32
    %17 = vector.broadcast %cst_11 : f32 to vector<64x1xf32>
    %18 = arith.divf %16, %17 : vector<64x1xf32>
    %19 = vector.broadcast %9 : vector<64x1xf32> to vector<64x32xf32>
    %20 = arith.subf %1, %19 : vector<64x32xf32>
    %cst_12 = arith.constant 9.99999974E-6 : f32
    %21 = vector.broadcast %cst_12 : f32 to vector<64x1xf32>
    %22 = arith.addf %18, %21 : vector<64x1xf32>
    %23 = math.rsqrt %22 : vector<64x1xf32>
    %24 = vector.broadcast %23 : vector<64x1xf32> to vector<64x32xf32>
    %25 = arith.mulf %20, %24 : vector<64x32xf32>
    %26 = vector.broadcast %4 : vector<1x32xf32> to vector<64x32xf32>
    %27 = arith.mulf %25, %26 : vector<64x32xf32>
    %28 = vector.broadcast %5 : vector<1x32xf32> to vector<64x32xf32>
    %29 = arith.addf %27, %28 : vector<64x32xf32>
    %cst_13 = arith.constant dense<0.000000e+00> : vector<64xf32>
    %30 = vector.multi_reduction <add>, %3, %cst_13 [1] : vector<64x32xf32> to vector<64xf32>
    %31 = vector.shape_cast %30 : vector<64xf32> to vector<64x1xf32>
    %cst_14 = arith.constant 3.200000e+01 : f32
    %32 = vector.broadcast %cst_14 : f32 to vector<64x1xf32>
    %33 = arith.divf %31, %32 : vector<64x1xf32>
    %34 = vector.broadcast %33 : vector<64x1xf32> to vector<64x32xf32>
    %35 = arith.subf %3, %34 : vector<64x32xf32>
    %36 = vector.broadcast %33 : vector<64x1xf32> to vector<64x32xf32>
    %37 = arith.subf %3, %36 : vector<64x32xf32>
    %38 = arith.mulf %35, %37 : vector<64x32xf32>
    %cst_15 = arith.constant dense<0.000000e+00> : vector<64xf32>
    %39 = vector.multi_reduction <add>, %38, %cst_15 [1] : vector<64x32xf32> to vector<64xf32>
    %40 = vector.shape_cast %39 : vector<64xf32> to vector<64x1xf32>
    %cst_16 = arith.constant 3.200000e+01 : f32
    %41 = vector.broadcast %cst_16 : f32 to vector<64x1xf32>
    %42 = arith.divf %40, %41 : vector<64x1xf32>
    %43 = vector.broadcast %33 : vector<64x1xf32> to vector<64x32xf32>
    %44 = arith.subf %3, %43 : vector<64x32xf32>
    %cst_17 = arith.constant 9.99999974E-6 : f32
    %45 = vector.broadcast %cst_17 : f32 to vector<64x1xf32>
    %46 = arith.addf %42, %45 : vector<64x1xf32>
    %47 = math.rsqrt %46 : vector<64x1xf32>
    %48 = vector.broadcast %47 : vector<64x1xf32> to vector<64x32xf32>
    %49 = arith.mulf %44, %48 : vector<64x32xf32>
    %50 = vector.broadcast %4 : vector<1x32xf32> to vector<64x32xf32>
    %51 = arith.mulf %49, %50 : vector<64x32xf32>
    %52 = vector.broadcast %5 : vector<1x32xf32> to vector<64x32xf32>
    %53 = arith.addf %51, %52 : vector<64x32xf32>
    %c0_18 = arith.constant 0 : index
    %c0_19 = arith.constant 0 : index
    %54 = vector.load %arg3[%c0_18, %c0_19] : memref<32x32xf32, #tpu.memory_space<vmem>>, vector<32x32xf32>
    %cst_20 = arith.constant dense<0.000000e+00> : vector<64x32xf32>
    %55 = tpu.matmul %29, %54, %cst_20 {dimension_numbers = #tpu.dot_dimension_numbers<[1], [0], [0], [1], [0, 0, 1, 1], [], []>} : vector<64x32xf32>, vector<32x32xf32>, vector<64x32xf32> -> vector<64x32xf32>
    %c0_21 = arith.constant 0 : index
    %c0_22 = arith.constant 0 : index
    %56 = vector.load %arg4[%c0_21, %c0_22] : memref<1x32xf32, #tpu.memory_space<vmem>>, vector<1x32xf32>
    %57 = vector.broadcast %56 : vector<1x32xf32> to vector<64x32xf32>
    %58 = arith.addf %55, %57 : vector<64x32xf32>
    %c0_23 = arith.constant 0 : index
    %c0_24 = arith.constant 0 : index
    %59 = vector.load %arg5[%c0_23, %c0_24] : memref<32x64xf32, #tpu.memory_space<vmem>>, vector<32x64xf32>
    %cst_25 = arith.constant dense<0.000000e+00> : vector<64x64xf32>
    %60 = tpu.matmul %53, %59, %cst_25 {dimension_numbers = #tpu.dot_dimension_numbers<[1], [0], [0], [1], [0, 0, 1, 1], [], []>} : vector<64x32xf32>, vector<32x64xf32>, vector<64x64xf32> -> vector<64x64xf32>
    %c0_26 = arith.constant 0 : index
    %c0_27 = arith.constant 0 : index
    %61 = vector.load %arg6[%c0_26, %c0_27] : memref<1x64xf32, #tpu.memory_space<vmem>>, vector<1x64xf32>
    %62 = vector.broadcast %61 : vector<1x64xf32> to vector<64x64xf32>
    %63 = arith.addf %60, %62 : vector<64x64xf32>
    %64 = vector.extract_strided_slice %63 {offsets = [0, 0], sizes = [64, 32], strides = [1, 1]} : vector<64x64xf32> to vector<64x32xf32>
    %65 = vector.extract_strided_slice %63 {offsets = [0, 32], sizes = [64, 32], strides = [1, 1]} : vector<64x64xf32> to vector<64x32xf32>
    %66 = vector.extract_strided_slice %58 {offsets = [0, 0], sizes = [64, 8], strides = [1, 1]} : vector<64x32xf32> to vector<64x8xf32>
    %67 = vector.extract_strided_slice %64 {offsets = [0, 0], sizes = [64, 8], strides = [1, 1]} : vector<64x32xf32> to vector<64x8xf32>
    %68 = vector.extract_strided_slice %65 {offsets = [0, 0], sizes = [64, 8], strides = [1, 1]} : vector<64x32xf32> to vector<64x8xf32>
    %cst_28 = arith.constant dense<0.000000e+00> : vector<64x64xf32>
    %69 = tpu.matmul %66, %67, %cst_28 {dimension_numbers = #tpu.dot_dimension_numbers<[1], [1], [0], [0], [0, 0, 1, 0], [], []>} : vector<64x8xf32>, vector<64x8xf32>, vector<64x64xf32> -> vector<64x64xf32>
    %cst_29 = arith.constant dense<0xFF800000> : vector<64xf32>
    %70 = vector.multi_reduction <maximumf>, %69, %cst_29 [1] : vector<64x64xf32> to vector<64xf32>
    %71 = vector.shape_cast %70 : vector<64xf32> to vector<64x1xf32>
    %72 = vector.broadcast %71 : vector<64x1xf32> to vector<64x64xf32>
    %73 = arith.subf %69, %72 : vector<64x64xf32>
    %74 = math.exp %73 : vector<64x64xf32>
    %cst_30 = arith.constant dense<0.000000e+00> : vector<64xf32>
    %75 = vector.multi_reduction <add>, %74, %cst_30 [1] : vector<64x64xf32> to vector<64xf32>
    %76 = vector.shape_cast %75 : vector<64xf32> to vector<64x1xf32>
    %cst_31 = arith.constant dense<0.000000e+00> : vector<64x8xf32>
    %77 = tpu.matmul %74, %68, %cst_31 {dimension_numbers = #tpu.dot_dimension_numbers<[1], [0], [0], [1], [0, 0, 1, 1], [], []>} : vector<64x64xf32>, vector<64x8xf32>, vector<64x8xf32> -> vector<64x8xf32>
    %78 = tpu.reciprocal %76 : vector<64x1xf32> -> vector<64x1xf32>
    %79 = vector.broadcast %78 : vector<64x1xf32> to vector<64x8xf32>
    %80 = arith.mulf %77, %79 : vector<64x8xf32>
    %81 = vector.extract_strided_slice %58 {offsets = [0, 8], sizes = [64, 8], strides = [1, 1]} : vector<64x32xf32> to vector<64x8xf32>
    %82 = vector.extract_strided_slice %64 {offsets = [0, 8], sizes = [64, 8], strides = [1, 1]} : vector<64x32xf32> to vector<64x8xf32>
    %83 = vector.extract_strided_slice %65 {offsets = [0, 8], sizes = [64, 8], strides = [1, 1]} : vector<64x32xf32> to vector<64x8xf32>
    %cst_32 = arith.constant dense<0.000000e+00> : vector<64x64xf32>
    %84 = tpu.matmul %81, %82, %cst_32 {dimension_numbers = #tpu.dot_dimension_numbers<[1], [1], [0], [0], [0, 0, 1, 0], [], []>} : vector<64x8xf32>, vector<64x8xf32>, vector<64x64xf32> -> vector<64x64xf32>
    %cst_33 = arith.constant dense<0xFF800000> : vector<64xf32>
    %85 = vector.multi_reduction <maximumf>, %84, %cst_33 [1] : vector<64x64xf32> to vector<64xf32>
    %86 = vector.shape_cast %85 : vector<64xf32> to vector<64x1xf32>
    %87 = vector.broadcast %86 : vector<64x1xf32> to vector<64x64xf32>
    %88 = arith.subf %84, %87 : vector<64x64xf32>
    %89 = math.exp %88 : vector<64x64xf32>
    %cst_34 = arith.constant dense<0.000000e+00> : vector<64xf32>
    %90 = vector.multi_reduction <add>, %89, %cst_34 [1] : vector<64x64xf32> to vector<64xf32>
    %91 = vector.shape_cast %90 : vector<64xf32> to vector<64x1xf32>
    %cst_35 = arith.constant dense<0.000000e+00> : vector<64x8xf32>
    %92 = tpu.matmul %89, %83, %cst_35 {dimension_numbers = #tpu.dot_dimension_numbers<[1], [0], [0], [1], [0, 0, 1, 1], [], []>} : vector<64x64xf32>, vector<64x8xf32>, vector<64x8xf32> -> vector<64x8xf32>
    %93 = tpu.reciprocal %91 : vector<64x1xf32> -> vector<64x1xf32>
    %94 = vector.broadcast %93 : vector<64x1xf32> to vector<64x8xf32>
    %95 = arith.mulf %92, %94 : vector<64x8xf32>
    %96 = vector.extract_strided_slice %58 {offsets = [0, 16], sizes = [64, 8], strides = [1, 1]} : vector<64x32xf32> to vector<64x8xf32>
    %97 = vector.extract_strided_slice %64 {offsets = [0, 16], sizes = [64, 8], strides = [1, 1]} : vector<64x32xf32> to vector<64x8xf32>
    %98 = vector.extract_strided_slice %65 {offsets = [0, 16], sizes = [64, 8], strides = [1, 1]} : vector<64x32xf32> to vector<64x8xf32>
    %cst_36 = arith.constant dense<0.000000e+00> : vector<64x64xf32>
    %99 = tpu.matmul %96, %97, %cst_36 {dimension_numbers = #tpu.dot_dimension_numbers<[1], [1], [0], [0], [0, 0, 1, 0], [], []>} : vector<64x8xf32>, vector<64x8xf32>, vector<64x64xf32> -> vector<64x64xf32>
    %cst_37 = arith.constant dense<0xFF800000> : vector<64xf32>
    %100 = vector.multi_reduction <maximumf>, %99, %cst_37 [1] : vector<64x64xf32> to vector<64xf32>
    %101 = vector.shape_cast %100 : vector<64xf32> to vector<64x1xf32>
    %102 = vector.broadcast %101 : vector<64x1xf32> to vector<64x64xf32>
    %103 = arith.subf %99, %102 : vector<64x64xf32>
    %104 = math.exp %103 : vector<64x64xf32>
    %cst_38 = arith.constant dense<0.000000e+00> : vector<64xf32>
    %105 = vector.multi_reduction <add>, %104, %cst_38 [1] : vector<64x64xf32> to vector<64xf32>
    %106 = vector.shape_cast %105 : vector<64xf32> to vector<64x1xf32>
    %cst_39 = arith.constant dense<0.000000e+00> : vector<64x8xf32>
    %107 = tpu.matmul %104, %98, %cst_39 {dimension_numbers = #tpu.dot_dimension_numbers<[1], [0], [0], [1], [0, 0, 1, 1], [], []>} : vector<64x64xf32>, vector<64x8xf32>, vector<64x8xf32> -> vector<64x8xf32>
    %108 = tpu.reciprocal %106 : vector<64x1xf32> -> vector<64x1xf32>
    %109 = vector.broadcast %108 : vector<64x1xf32> to vector<64x8xf32>
    %110 = arith.mulf %107, %109 : vector<64x8xf32>
    %111 = vector.extract_strided_slice %58 {offsets = [0, 24], sizes = [64, 8], strides = [1, 1]} : vector<64x32xf32> to vector<64x8xf32>
    %112 = vector.extract_strided_slice %64 {offsets = [0, 24], sizes = [64, 8], strides = [1, 1]} : vector<64x32xf32> to vector<64x8xf32>
    %113 = vector.extract_strided_slice %65 {offsets = [0, 24], sizes = [64, 8], strides = [1, 1]} : vector<64x32xf32> to vector<64x8xf32>
    %cst_40 = arith.constant dense<0.000000e+00> : vector<64x64xf32>
    %114 = tpu.matmul %111, %112, %cst_40 {dimension_numbers = #tpu.dot_dimension_numbers<[1], [1], [0], [0], [0, 0, 1, 0], [], []>} : vector<64x8xf32>, vector<64x8xf32>, vector<64x64xf32> -> vector<64x64xf32>
    %cst_41 = arith.constant dense<0xFF800000> : vector<64xf32>
    %115 = vector.multi_reduction <maximumf>, %114, %cst_41 [1] : vector<64x64xf32> to vector<64xf32>
    %116 = vector.shape_cast %115 : vector<64xf32> to vector<64x1xf32>
    %117 = vector.broadcast %116 : vector<64x1xf32> to vector<64x64xf32>
    %118 = arith.subf %114, %117 : vector<64x64xf32>
    %119 = math.exp %118 : vector<64x64xf32>
    %cst_42 = arith.constant dense<0.000000e+00> : vector<64xf32>
    %120 = vector.multi_reduction <add>, %119, %cst_42 [1] : vector<64x64xf32> to vector<64xf32>
    %121 = vector.shape_cast %120 : vector<64xf32> to vector<64x1xf32>
    %cst_43 = arith.constant dense<0.000000e+00> : vector<64x8xf32>
    %122 = tpu.matmul %119, %113, %cst_43 {dimension_numbers = #tpu.dot_dimension_numbers<[1], [0], [0], [1], [0, 0, 1, 1], [], []>} : vector<64x64xf32>, vector<64x8xf32>, vector<64x8xf32> -> vector<64x8xf32>
    %123 = tpu.reciprocal %121 : vector<64x1xf32> -> vector<64x1xf32>
    %124 = vector.broadcast %123 : vector<64x1xf32> to vector<64x8xf32>
    %125 = arith.mulf %122, %124 : vector<64x8xf32>
    %126 = tpu.concatenate %80, %95, %110, %125 in 1 : vector<64x8xf32>, vector<64x8xf32>, vector<64x8xf32>, vector<64x8xf32> -> vector<64x32xf32>
    %c0_44 = arith.constant 0 : index
    %c0_45 = arith.constant 0 : index
    %127 = vector.load %arg7[%c0_44, %c0_45] : memref<32x32xf32, #tpu.memory_space<vmem>>, vector<32x32xf32>
    %cst_46 = arith.constant dense<0.000000e+00> : vector<64x32xf32>
    %128 = tpu.matmul %126, %127, %cst_46 {dimension_numbers = #tpu.dot_dimension_numbers<[1], [0], [0], [1], [0, 0, 1, 1], [], []>} : vector<64x32xf32>, vector<32x32xf32>, vector<64x32xf32> -> vector<64x32xf32>
    %c0_47 = arith.constant 0 : index
    %c0_48 = arith.constant 0 : index
    %129 = vector.load %arg8[%c0_47, %c0_48] : memref<1x32xf32, #tpu.memory_space<vmem>>, vector<1x32xf32>
    %130 = vector.broadcast %129 : vector<1x32xf32> to vector<64x32xf32>
    %131 = arith.addf %128, %130 : vector<64x32xf32>
    %132 = arith.addf %131, %1 : vector<64x32xf32>
    %133 = vector.shape_cast %132 : vector<64x32xf32> to vector<1x64x32xf32>
    %c0_49 = arith.constant 0 : index
    %c0_50 = arith.constant 0 : index
    %c0_51 = arith.constant 0 : index
    %134 = vector.load %arg11[%c0_49, %c0_50, %c0_51] : memref<1x64x32xf32, #tpu.memory_space<vmem>>, vector<1x64x32xf32>
    tpu.vector_store %arg11[%c0_49, %c0_50, %c0_51], %133 {strides = array<i32>} : memref<1x64x32xf32, #tpu.memory_space<vmem>>, vector<1x64x32xf32>,
    return
  }
  func.func @transform_0(%arg0: i32) -> (i32, i32, i32) {
    %c0_i32 = arith.constant 0 : i32
    %c0_i32_0 = arith.constant 0 : i32
    %c0_i32_1 = arith.constant 0 : i32
    return %arg0, %c0_i32, %c0_i32_0 : i32, i32, i32
  }
  func.func @transform_1(%arg0: i32) -> (i32, i32, i32) {
    %c0_i32 = arith.constant 0 : i32
    %c0_i32_0 = arith.constant 0 : i32
    %c0_i32_1 = arith.constant 0 : i32
    return %arg0, %c0_i32, %c0_i32_0 : i32, i32, i32
  }
  func.func @transform_2(%arg0: i32) -> (i32, i32) {
    %c0_i32 = arith.constant 0 : i32
    %c0_i32_0 = arith.constant 0 : i32
    %c0_i32_1 = arith.constant 0 : i32
    return %c0_i32, %c0_i32_0 : i32, i32
  }
  func.func @transform_3(%arg0: i32) -> (i32, i32) {
    %c0_i32 = arith.constant 0 : i32
    %c0_i32_0 = arith.constant 0 : i32
    %c0_i32_1 = arith.constant 0 : i32
    return %c0_i32, %c0_i32_0 : i32, i32
  }
  func.func @transform_4(%arg0: i32) -> (i32, i32) {
    %c0_i32 = arith.constant 0 : i32
    %c0_i32_0 = arith.constant 0 : i32
    %c0_i32_1 = arith.constant 0 : i32
    return %c0_i32, %c0_i32_0 : i32, i32
  }
  func.func @transform_5(%arg0: i32) -> (i32, i32) {
    %c0_i32 = arith.constant 0 : i32
    %c0_i32_0 = arith.constant 0 : i32
    %c0_i32_1 = arith.constant 0 : i32
    return %c0_i32, %c0_i32_0 : i32, i32
  }
  func.func @transform_6(%arg0: i32) -> (i32, i32) {
    %c0_i32 = arith.constant 0 : i32
    %c0_i32_0 = arith.constant 0 : i32
    %c0_i32_1 = arith.constant 0 : i32
    return %c0_i32, %c0_i32_0 : i32, i32
  }
  func.func @transform_7(%arg0: i32) -> (i32, i32) {
    %c0_i32 = arith.constant 0 : i32
    %c0_i32_0 = arith.constant 0 : i32
    %c0_i32_1 = arith.constant 0 : i32
    return %c0_i32, %c0_i32_0 : i32, i32
  }
  func.func @transform_8(%arg0: i32) -> (i32, i32) {
    %c0_i32 = arith.constant 0 : i32
    %c0_i32_0 = arith.constant 0 : i32
    %c0_i32_1 = arith.constant 0 : i32
    return %c0_i32, %c0_i32_0 : i32, i32
  }
  func.func @transform_9(%arg0: i32) -> (i32, i32) {
    %c0_i32 = arith.constant 0 : i32
    %c0_i32_0 = arith.constant 0 : i32
    %c0_i32_1 = arith.constant 0 : i32
    return %c0_i32, %c0_i32_0 : i32, i32
  }
  func.func @transform_10(%arg0: i32) -> (i32, i32, i32) {
    %c0_i32 = arith.constant 0 : i32
    %c0_i32_0 = arith.constant 0 : i32
    %c0_i32_1 = arith.constant 0 : i32
    return %arg0, %c0_i32, %c0_i32_0 : i32, i32, i32
  }
}

</mosaic_0001>

<bundles_post_ra>
// kernel: tpu_custom_call.1
= control target key start
LH: loop header
LB: loop body
LE: loop exit
PB: predicated region body
PF: predicated region fallthrough
CT: control target
= control target key end

     0   :  { %s3767_s13 = smov 0   ;;  %s4803_s0 = inlined_call_operand.vmem [shape: f32[2,64,32], index: 0, kind: input, shape index: {}]   ;;  %s4804_s1 = inlined_call_operand.vmem [shape: f32[2,64,32], index: 1, kind: input, shape index: {}]   ;;  %s4805_s2 = inlined_call_operand.vmem [shape: f32[32,32], index: 2, kind: input, shape index: {}]   ;;  %s4806_s3 = inlined_call_operand.vmem [shape: f32[1,32], index: 3, kind: input, shape index: {}]   ;;  %s4807_s4 = inlined_call_operand.vmem [shape: f32[32,64], index: 4, kind: input, shape index: {}]   ;;  %s4808_s5 = inlined_call_operand.vmem [shape: f32[1,64], index: 5, kind: input, shape index: {}]   ;;  %s4809_s6 = inlined_call_operand.vmem [shape: f32[32,32], index: 6, kind: input, shape index: {}]   ;;  %s4810_s7 = inlined_call_operand.vmem [shape: f32[1,32], index: 7, kind: input, shape index: {}]   ;;  %s4811_s8 = inlined_call_operand.vmem [shape: f32[1,32], index: 8, kind: input, shape index: {}]   ;;  %s4812_s9 = inlined_call_operand.vmem [shape: f32[1,32], index: 9, kind: input, shape index: {}]   ;;  %s4813_s10 = inlined_call_operand.vmem [shape: f32[2,64,32], index: 10, kind: output, shape index: {}]  }
   0x1 LB: > { %s2903_s14 = sadd.s32 4294967295, %s3700_s13   ;;  %p2907_p0 = scmp.ge.s32.totalorder %s3700_s13, 1  ;;  %s3700_s13 = sphi %s3767_s13, %s20_s13  }
   0x2   : > { %p322_p1 = scmp.lt.s32.totalorder %s3700_s13, 3 }
   0x4   : > { %p323_p2 = pnand %p2907_p0, %p322_p1 }
   0x5   : > { %p365_p3 = scmp.lt.s32.totalorder (!%p323_p2), %s2903_s14, 1  ;;  %s3702_s27 = smov (!%p323_p2), 96  }
   0x6   : > { %326 = sbr.rel (%p323_p2) target bundleno = 2845 (0xb1d), region = 60  ;;  %s3703_s28 = smov (!%p323_p2), 120  }
   0x7   : > { %s3704_s11 = smov (!%p323_p2), 88   ;;  %s3705_s12 = smov (!%p323_p2), 112  }
   0x8   : > { %s3707_s16 = smov (!%p323_p2), 104   ;;  %s3708_s17 = smov (!%p323_p2), 72  }
   0x9   : > { %s3710_s19 = smov (!%p323_p2), 16   ;;  %s3711_s29 = smov (!%p323_p2), 24  }
   0xb   : > { %s4815_s14 = smov (!%p365_p3, %s2903_s14), 1  ;;  %vm398_vm0 = vcmask 261120   ;;  %vm932_vm1 = vcmask 64512   ;;  %vm1086_vm2 = vcmask 523264   ;;  %vm2662_vm3 = vcmask 130048  }
   0xc   : > { %s3775_s15 = sshll.u32 %s4815_s14, 6  ;;  %s3706_s14 = smov 80   ;;  %vm2671_vm4 = vcmask 195584  }
   0xd   : > { %s374_s18 = scalar_lea.vmem %s4804_s1, %s3775_s15  ;;  %s3795_s21 = scalar_lea.vmem %s4803_s0, %s3775_s15 }
   0xe   : > { %v388_v0 = vld [vmem:[%s374_s18] sm:$0xff]  ;;  %v390_v1 = vld [vmem:[%s374_s18 + $0x10] sm:$0xff]  ;;  %v389_v2 = vld [vmem:[%s374_s18 + $0x8] sm:$0xff] }
   0xf   : > { %v532_v3 = vsel %vm398_vm0, %v388_v0, 0.0  ;;  %v538_v4 = vsel %vm398_vm0, %v390_v1, 0.0  ;;  %v391_v5 = vld [vmem:[%s374_s18 + $0x18] sm:$0xff]  ;;  %v535_v6 = vsel %vm398_vm0, %v389_v2, 0.0  ;;  %v392_v8 = vld [vmem:[%s374_s18 + $0x20] sm:$0xff]  ;;  %v393_v9 = vld [vmem:[%s374_s18 + $0x28] sm:$0xff] }
  0x10   : > { %533 = vadd.xlane.f32.xlu0 %v532_v3  ;;  %539 = vadd.xlane.f32.xlu1 %v538_v4  ;;  %v541_v7 = vsel %vm398_vm0, %v391_v5, 0.0  ;;  %v544_v10 = vsel %vm398_vm0, %v392_v8, 0.0  ;;  %v547_v11 = vsel %vm398_vm0, %v393_v9, 0.0  ;;  %v3787_v12 = vld [vmem:[%s374_s18 + $0x30] sm:$0xff]  ;;  %v3789_v13 = vld [vmem:[%s374_s18 + $0x38] sm:$0xff]  ;;  %v3802_v16 = vld [vmem:[%s3795_s21] sm:$0xff] }
  0x11   : > { %v550_v14 = vsel %vm398_vm0, %v3787_v12, 0.0  ;;  %v553_v15 = vsel %vm398_vm0, %v3789_v13, 0.0  ;;  %v3805_v17 = vld [vmem:[%s3795_s21 + $0x8] sm:$0xff]  ;;  %v399_v18 = vsel %vm398_vm0, %v3802_v16, 0.0  ;;  %v3812_v20 = vld [vmem:[%s3795_s21 + $0x10] sm:$0xff]  ;;  %v3815_v21 = vld [vmem:[%s3795_s21 + $0x18] sm:$0xff] }
  0x12   : > { %v402_v19 = vsel %vm398_vm0, %v3805_v17, 0.0  ;;  %v405_v22 = vsel %vm398_vm0, %v3812_v20, 0.0  ;;  %v408_v23 = vsel %vm398_vm0, %v3815_v21, 0.0  ;;  %v3822_v24 = vld [vmem:[%s3795_s21 + $0x20] sm:$0xff]  ;;  %v3825_v25 = vld [vmem:[%s3795_s21 + $0x28] sm:$0xff]  ;;  %v3832_v28 = vld [vmem:[%s3795_s21 + $0x30] sm:$0xff] }
  0x13   : > { %v411_v26 = vsel %vm398_vm0, %v3822_v24, 0.0  ;;  %v414_v27 = vsel %vm398_vm0, %v3825_v25, 0.0  ;;  %v3835_v29 = vld [vmem:[%s3795_s21 + $0x38] sm:$0xff]  ;;  %v417_v30 = vsel %vm398_vm0, %v3832_v28, 0.0  ;;  %s3709_s18 = smov 8  }
  0x14   : > { %536 = vadd.xlane.f32.xlu0 %v535_v6  ;;  %542 = vadd.xlane.f32.xlu1 %v541_v7  ;;  %v420_v31 = vsel %vm398_vm0, %v3835_v29, 0.0 }
  0x18   : > { %545 = vadd.xlane.f32.xlu0 %v544_v10  ;;  %548 = vadd.xlane.f32.xlu1 %v547_v11 }
  0x1c   : > { %551 = vadd.xlane.f32.xlu0 %v550_v14  ;;  %554 = vadd.xlane.f32.xlu1 %v553_v15 }
  0x20   : > { %400 = vadd.xlane.f32.xlu0 %v399_v18  ;;  %403 = vadd.xlane.f32.xlu1 %v402_v19 }
  0x24   : > { %406 = vadd.xlane.f32.xlu0 %v405_v22  ;;  %409 = vadd.xlane.f32.xlu1 %v408_v23 }
  0x28   : > { %412 = vadd.xlane.f32.xlu0 %v411_v26  ;;  %415 = vadd.xlane.f32.xlu1 %v414_v27 }
  0x2c   : > { %418 = vadd.xlane.f32.xlu0 %v417_v30  ;;  %421 = vadd.xlane.f32.xlu1 %v420_v31 }
  0x99   : > { %v534_v32 = vpop.xlane.xlu0 %533  ;;  %v540_v33 = vpop.xlane.xlu1 %539 }
  0x9a   : > { %v556_v34 = vmul.f32 0.03125, %v534_v32  ;;  %v558_v35 = vmul.f32 0.03125, %v540_v33 }
  0x9c   : > { %v3841_v36 = vsub.f32 %v388_v0, %v556_v34  ;;  %v3843_v37 = vsub.f32 %v390_v1, %v558_v35 }
  0x9d   : > { %v537_v38 = vpop.xlane.xlu0 %536  ;;  %v543_v39 = vpop.xlane.xlu1 %542 }
  0x9e   : > { %v557_v40 = vmul.f32 0.03125, %v537_v38  ;;  %v559_v41 = vmul.f32 0.03125, %v543_v39  ;;  %v572_v42 = vmul.f32 %v3841_v36, %v3841_v36  ;;  %v574_v43 = vmul.f32 %v3843_v37, %v3843_v37 }
  0xa0   : > { %v3849_v44 = vsub.f32 %v389_v2, %v557_v40  ;;  %v3851_v45 = vsub.f32 %v391_v5, %v559_v41  ;;  %v580_v46 = vsel %vm398_vm0, %v572_v42, 0.0  ;;  %v586_v49 = vsel %vm398_vm0, %v574_v43, 0.0 }
  0xa1   : > { %v546_v47 = vpop.xlane.xlu0 %545  ;;  %581 = vadd.xlane.f32.xlu0 %v580_v46  ;;  %v549_v48 = vpop.xlane.xlu1 %548 }
  0xa2   : > { %v560_v50 = vmul.f32 0.03125, %v546_v47  ;;  %v561_v51 = vmul.f32 0.03125, %v549_v48  ;;  %v573_v52 = vmul.f32 %v3849_v44, %v3849_v44  ;;  %v575_v53 = vmul.f32 %v3851_v45, %v3851_v45 }
  0xa4   : > { %v3859_v54 = vsub.f32 %v392_v8, %v560_v50  ;;  %v3861_v55 = vsub.f32 %v393_v9, %v561_v51  ;;  %v583_v56 = vsel %vm398_vm0, %v573_v52, 0.0  ;;  %v589_v59 = vsel %vm398_vm0, %v575_v53, 0.0  ;;  %v794_v53 = vld [vmem:[%s4807_s4 + $0x10] sm:$0xff] }
  0xa5   : > { %v552_v57 = vpop.xlane.xlu0 %551  ;;  %584 = vadd.xlane.f32.xlu1 %v583_v56  ;;  %587 = vadd.xlane.f32.xlu0 %v586_v49  ;;  %v555_v58 = vpop.xlane.xlu1 %554  ;;  %v793_v56 = vld [vmem:[%s4807_s4 + $0x8] sm:$0xff] }
  0xa6   : > { %v562_v60 = vmul.f32 0.03125, %v552_v57  ;;  %v563_v61 = vmul.f32 0.03125, %v555_v58  ;;  %v576_v62 = vmul.f32 %v3859_v54, %v3859_v54  ;;  %v577_v63 = vmul.f32 %v3861_v55, %v3861_v55  ;;  %v792_v57 = vld [vmem:[%s4807_s4] sm:$0xff]  ;;  %v655_v58 = vld [vmem:[%s4805_s2 + $0x18] sm:$0xff] }
  0xa7   : > { %3208 = vmatprep.subr.mxu0 %v655_v58 }
  0xa8   : > { %v3870_v0 = vsub.f32 %v3787_v12, %v562_v60  ;;  %v3873_v1 = vsub.f32 %v3789_v13, %v563_v61  ;;  %v592_v2 = vsel %vm398_vm0, %v576_v62, 0.0  ;;  %v595_v4 = vsel %vm398_vm0, %v577_v63, 0.0  ;;  %3209 = vmatpush3.msra.mxu0 %v655_v58  ;;  %v653_v60 = vld [vmem:[%s4805_s2 + $0x8] sm:$0xff]  ;;  %v652_v61 = vld [vmem:[%s4805_s2] sm:$0xff] }
  0xa9   : > { %590 = vadd.xlane.f32.xlu1 %v589_v59  ;;  %593 = vadd.xlane.f32.xlu0 %v592_v2  ;;  %v401_v3 = vpop.xlane.xlu0 %400  ;;  %v404_v5 = vpop.xlane.xlu1 %403  ;;  %v654_v59 = vld [vmem:[%s4805_s2 + $0x10] sm:$0xff] }
  0xaa   : > { %v424_v6 = vmul.f32 0.03125, %v401_v3  ;;  %v425_v7 = vmul.f32 0.03125, %v404_v5  ;;  %v578_v8 = vmul.f32 %v3870_v0, %v3870_v0  ;;  %v579_v9 = vmul.f32 %v3873_v1, %v3873_v1  ;;  %3210 = vmatprep.subr.mxu0 %v654_v59 }
  0xab   : > { %3211 = vmatpush3.msra.mxu0 %v654_v59 }
  0xac   : > { %v3882_v10 = vsub.f32 %v3802_v16, %v424_v6  ;;  %v3885_v11 = vsub.f32 %v3805_v17, %v425_v7  ;;  %v598_v12 = vsel %vm398_vm0, %v578_v8, 0.0  ;;  %v601_v14 = vsel %vm398_vm0, %v579_v9, 0.0  ;;  %3212 = vmatprep.subr.mxu0 %v653_v60 }
  0xad   : > { %596 = vadd.xlane.f32.xlu1 %v595_v4  ;;  %599 = vadd.xlane.f32.xlu0 %v598_v12  ;;  %v407_v13 = vpop.xlane.xlu0 %406  ;;  %v410_v15 = vpop.xlane.xlu1 %409 }
  0xae   : > { %v426_v18 = vmul.f32 0.03125, %v407_v13  ;;  %v427_v19 = vmul.f32 0.03125, %v410_v15  ;;  %v440_v22 = vmul.f32 %v3882_v10, %v3882_v10  ;;  %v441_v16 = vmul.f32 %v3885_v11, %v3885_v11  ;;  %3213 = vmatpush3.msra.mxu0 %v653_v60 }
  0xaf   : > { %3214 = vmatprep.subr.mxu0 %v652_v61 }
  0xb0   : > { %v3894_v23 = vsub.f32 %v3812_v20, %v426_v18  ;;  %v3897_v17 = vsub.f32 %v3815_v21, %v427_v19  ;;  %v448_v26 = vsel %vm398_vm0, %v440_v22, 0.0  ;;  %v451_v30 = vsel %vm398_vm0, %v441_v16, 0.0  ;;  %3215 = vmatpush3.msra.mxu0 %v652_v61 }
  0xb1   : > { %602 = vadd.xlane.f32.xlu1 %v601_v14  ;;  %449 = vadd.xlane.f32.xlu0 %v448_v26  ;;  %v413_v27 = vpop.xlane.xlu0 %412  ;;  %v416_v31 = vpop.xlane.xlu1 %415 }
  0xb2   : > { %v428_v32 = vmul.f32 0.03125, %v413_v27  ;;  %v429_v33 = vmul.f32 0.03125, %v416_v31  ;;  %v442_v34 = vmul.f32 %v3894_v23, %v3894_v23  ;;  %v443_v20 = vmul.f32 %v3897_v17, %v3897_v17 }
  0xb4   : > { %v3906_v35 = vsub.f32 %v3822_v24, %v428_v32  ;;  %v3909_v21 = vsub.f32 %v3825_v25, %v429_v33  ;;  %v454_v38 = vsel %vm398_vm0, %v442_v34, 0.0  ;;  %v457_v40 = vsel %vm398_vm0, %v443_v20, 0.0 }
  0xb5   : > { %452 = vadd.xlane.f32.xlu1 %v451_v30  ;;  %455 = vadd.xlane.f32.xlu0 %v454_v38  ;;  %v419_v39 = vpop.xlane.xlu0 %418  ;;  %v422_v41 = vpop.xlane.xlu1 %421  ;;  %v3958_v38 = vld [vmem:[%s4811_s8] ss:$0 sm:$0xff] }
  0xb6   : > { %v430_v42 = vmul.f32 0.03125, %v419_v39  ;;  %v431_v43 = vmul.f32 0.03125, %v422_v41  ;;  %v444_v46 = vmul.f32 %v3906_v35, %v3906_v35  ;;  %v445_v24 = vmul.f32 %v3909_v21, %v3909_v21 }
  0xb8   : > { %v3918_v47 = vsub.f32 %v3832_v28, %v430_v42  ;;  %v3921_v25 = vsub.f32 %v3835_v29, %v431_v43  ;;  %v460_v48 = vsel %vm398_vm0, %v444_v46, 0.0  ;;  %v463_v49 = vsel %vm398_vm0, %v445_v24, 0.0  ;;  %v795_v29 = vld [vmem:[%s4807_s4 + $0x18] sm:$0xff]  ;;  %v3964_v46 = vld [vmem:[%s4812_s9] ss:$0 sm:$0xff] }
  0xb9   : > { %458 = vadd.xlane.f32.xlu1 %v457_v40  ;;  %461 = vadd.xlane.f32.xlu0 %v460_v48 }
  0xba   : > { %v446_v50 = vmul.f32 %v3918_v47, %v3918_v47  ;;  %v447_v51 = vmul.f32 %v3921_v25, %v3921_v25  ;;  %3228 = vmatprep.subr.mxu1 %v795_v29 }
  0xbb   : > { %3229 = vmatpush3.msra.mxu1 %v795_v29 }
  0xbc   : > { %v466_v52 = vsel %vm398_vm0, %v446_v50, 0.0  ;;  %v469_v28 = vsel %vm398_vm0, %v447_v51, 0.0  ;;  %3230 = vmatprep.subr.mxu1 %v794_v53 }
  0xbd   : > { %464 = vadd.xlane.f32.xlu1 %v463_v49  ;;  %467 = vadd.xlane.f32.xlu0 %v466_v52 }
  0xbe   : > { %3231 = vmatpush3.msra.mxu1 %v794_v53 }
  0xbf   : > { %3232 = vmatprep.subr.mxu1 %v793_v56 }
  0xc0   : > { %3233 = vmatpush3.msra.mxu1 %v793_v56 }
  0xc1   : > { %470 = vadd.xlane.f32.xlu1 %v469_v28  ;;  %3234 = vmatprep.subr.mxu1 %v792_v57 }
  0xc2   : > { %3235 = vmatpush3.msra.mxu1 %v792_v57 }
 0x12a   : > { %v582_v62 = vpop.xlane.xlu0 %581 }
 0x12b   : > { %v604_v63 = vmul.f32 0.03125, %v582_v62 }
 0x12d   : > { %v612_v2 = vadd.f32 1e-05, %v604_v63 }
 0x12e   : > { %v585_v3 = vpop.xlane.xlu1 %584  ;;  %v588_v4 = vpop.xlane.xlu0 %587 }
 0x12f   : > { %3526 = vrsqrt.f32 %v612_v2  ;;  %v605_v5 = vmul.f32 0.03125, %v585_v3  ;;  %v606_v6 = vmul.f32 0.03125, %v588_v4 }
 0x131   : > { %v613_v7 = vadd.f32 1e-05, %v605_v5  ;;  %v614_v8 = vadd.f32 1e-05, %v606_v6 }
 0x132   : > { %v591_v9 = vpop.xlane.xlu1 %590  ;;  %v594_v12 = vpop.xlane.xlu0 %593 }
 0x133   : > { %3528 = vrsqrt.f32 %v613_v7  ;;  %v607_v13 = vmul.f32 0.03125, %v591_v9  ;;  %v608_v14 = vmul.f32 0.03125, %v594_v12 }
 0x134   : > { %3530 = vrsqrt.f32 %v614_v8 }
 0x135   : > { %v615_v15 = vadd.f32 1e-05, %v607_v13  ;;  %v616_v18 = vadd.f32 1e-05, %v608_v14 }
 0x136   : > { %v597_v19 = vpop.xlane.xlu1 %596  ;;  %v600_v22 = vpop.xlane.xlu0 %599 }
 0x137   : > { %3532 = vrsqrt.f32 %v615_v15  ;;  %v609_v16 = vmul.f32 0.03125, %v597_v19  ;;  %v610_v26 = vmul.f32 0.03125, %v600_v22 }
 0x138   : > { %3534 = vrsqrt.f32 %v616_v18 }
 0x139   : > { %v617_v27 = vadd.f32 1e-05, %v609_v16  ;;  %v618_v30 = vadd.f32 1e-05, %v610_v26 }
 0x13a   : > { %v603_v31 = vpop.xlane.xlu1 %602  ;;  %v450_v32 = vpop.xlane.xlu0 %449 }
 0x13b   : > { %3536 = vrsqrt.f32 %v617_v27  ;;  %v611_v33 = vmul.f32 0.03125, %v603_v31  ;;  %v472_v34 = vmul.f32 0.03125, %v450_v32 }
 0x13c   : > { %v3527_v20 = vpop.eup %3526  ;;  %3538 = vrsqrt.f32 %v618_v30 }
 0x13d   : > { %v619_v39 = vadd.f32 1e-05, %v611_v33  ;;  %v480_v40 = vadd.f32 1e-05, %v472_v34  ;;  %v628_v41 = vmul.f32 %v3527_v20, %v3841_v36 }
 0x13e   : > { %v453_v42 = vpop.xlane.xlu1 %452  ;;  %v456_v43 = vpop.xlane.xlu0 %455 }
 0x13f   : > { %3540 = vrsqrt.f32 %v619_v39  ;;  %v473_v24 = vmul.f32 0.03125, %v453_v42  ;;  %v474_v48 = vmul.f32 0.03125, %v456_v43  ;;  %v636_v49 = vmul.f32 %v3958_v38, %v628_v41 }
 0x140   : > { %v3529_v50 = vpop.eup %3528  ;;  %3542 = vrsqrt.f32 %v480_v40 }
 0x141   : > { %v3531_v51 = vpop.eup %3530  ;;  %v481_v52 = vadd.f32 1e-05, %v473_v24  ;;  %v482_v28 = vadd.f32 1e-05, %v474_v48  ;;  %v644_v29 = vadd.f32 %v3964_v46, %v636_v49  ;;  %v629_v36 = vmul.f32 %v3529_v50, %v3849_v44 }
 0x142   : > { %v459_v53 = vpop.xlane.xlu1 %458  ;;  %v462_v56 = vpop.xlane.xlu0 %461  ;;  %v630_v57 = vmul.f32 %v3531_v51, %v3843_v37 }
 0x143   : > { %3544 = vrsqrt.f32 %v481_v52  ;;  %v475_v58 = vmul.f32 0.03125, %v459_v53  ;;  %v476_v59 = vmul.f32 0.03125, %v462_v56  ;;  %3236 = vmatprep.mubr.msk.f32.mxu1 %vm398_vm0, %v644_v29  ;;  %v637_v60 = vmul.f32 %v3958_v38, %v629_v36 }
 0x144   : > { %v3533_v61 = vpop.eup %3532  ;;  %3546 = vrsqrt.f32 %v482_v28  ;;  %v638_v62 = vmul.f32 %v3958_v38, %v630_v57 }
 0x145   : > { %v3535_v63 = vpop.eup %3534  ;;  %v483_v2 = vadd.f32 1e-05, %v475_v58  ;;  %v484_v3 = vadd.f32 1e-05, %v476_v59  ;;  %v645_v44 = vadd.f32 %v3964_v46, %v637_v60  ;;  %v631_v4 = vmul.f32 %v3533_v61, %v3851_v45 }
 0x146   : > { %v465_v5 = vpop.xlane.xlu1 %464  ;;  %v468_v37 = vpop.xlane.xlu0 %467  ;;  %v646_v6 = vadd.f32 %v3964_v46, %v638_v62  ;;  %v632_v7 = vmul.f32 %v3535_v63, %v3859_v54 }
 0x147   : > { %3548 = vrsqrt.f32 %v483_v2  ;;  %v477_v8 = vmul.f32 0.03125, %v465_v5  ;;  %v478_v9 = vmul.f32 0.03125, %v468_v37  ;;  %3237 = vmatmul.mubr.msk.f32.vlgmr.msra.gmra.mxu1 %vm398_vm0, %v645_v44  ;;  %v639_v12 = vmul.f32 %v3958_v38, %v631_v4  ;;  %v2925_v44 = vld [vmem:[%s4808_s5] ss:$0 sm:$0xff] }
 0x148   : > { %v3537_v13 = vpop.eup %3536  ;;  %3550 = vrsqrt.f32 %v484_v3  ;;  %3239 = vmatprep.mubr.msk.f32.mxu1 %vm398_vm0, %v646_v6  ;;  %v640_v14 = vmul.f32 %v3958_v38, %v632_v7 }
 0x149   : > { %v3539_v45 = vpop.eup %3538  ;;  %v485_v15 = vadd.f32 1e-05, %v477_v8  ;;  %v486_v18 = vadd.f32 1e-05, %v478_v9  ;;  %v647_v19 = vadd.f32 %v3964_v46, %v639_v12  ;;  %v633_v54 = vmul.f32 %v3537_v13, %v3861_v55 }
 0x14a   : > { %v471_v22 = vpop.xlane.xlu1 %470  ;;  %v648_v16 = vadd.f32 %v3964_v46, %v640_v14  ;;  %v634_v26 = vmul.f32 %v3539_v45, %v3870_v0 }
 0x14b   : > { %3552 = vrsqrt.f32 %v485_v15  ;;  %v479_v27 = vmul.f32 0.03125, %v471_v22  ;;  %3240 = vmatmul.mubr.msk.f32.gmra.mxu1 %vm398_vm0, %v647_v19  ;;  %v641_v30 = vmul.f32 %v3958_v38, %v633_v54  ;;  %v2916_v54 = vld [vmem:[%s4806_s3] ss:$0 sm:$0xff] }
 0x14c   : > { %v3541_v31 = vpop.eup %3540  ;;  %3554 = vrsqrt.f32 %v486_v18  ;;  %3242 = vmatprep.mubr.msk.f32.mxu1 %vm398_vm0, %v648_v16  ;;  %v642_v32 = vmul.f32 %v3958_v38, %v634_v26 }
 0x14d   : > { %v3543_v33 = vpop.eup %3542  ;;  %v487_v34 = vadd.f32 1e-05, %v479_v27  ;;  %v649_v55 = vadd.f32 %v3964_v46, %v641_v30  ;;  %v635_v20 = vmul.f32 %v3541_v31, %v3873_v1 }
 0x14e   : > { %v650_v0 = vadd.f32 %v3964_v46, %v642_v32  ;;  %v496_v39 = vmul.f32 %v3543_v33, %v3882_v10 }
 0x14f   : > { %3556 = vrsqrt.f32 %v487_v34  ;;  %3243 = vmatmul.mubr.msk.f32.gmra.mxu1 %vm398_vm0, %v649_v55  ;;  %v643_v40 = vmul.f32 %v3958_v38, %v635_v20 }
 0x150   : > { %v3545_v41 = vpop.eup %3544  ;;  %3245 = vmatprep.mubr.msk.f32.mxu1 %vm398_vm0, %v650_v0  ;;  %v510_v42 = vmul.f32 %v3958_v38, %v496_v39 }
 0x151   : > { %v3547_v43 = vpop.eup %3546  ;;  %v651_v24 = vadd.f32 %v3964_v46, %v643_v40  ;;  %v497_v48 = vmul.f32 %v3545_v41, %v3885_v11 }
 0x152   : > { %v524_v1 = vadd.f32 %v3964_v46, %v510_v42  ;;  %v498_v49 = vmul.f32 %v3547_v43, %v3894_v23 }
 0x153   : > { %3246 = vmatmul.mubr.msk.f32.gmra.mxu1 %vm398_vm0, %v651_v24  ;;  %v511_v10 = vmul.f32 %v3958_v38, %v497_v48 }
 0x154   : > { %v3549_v50 = vpop.eup %3548  ;;  %3216 = vmatprep.mubr.msk.f32.mxu0 %vm398_vm0, %v524_v1  ;;  %v512_v51 = vmul.f32 %v3958_v38, %v498_v49 }
 0x155   : > { %v3551_v52 = vpop.eup %3550  ;;  %v525_v28 = vadd.f32 %v3964_v46, %v511_v10  ;;  %v499_v29 = vmul.f32 %v3549_v50, %v3897_v17 }
 0x156   : > { %v526_v11 = vadd.f32 %v3964_v46, %v512_v51  ;;  %v500_v36 = vmul.f32 %v3551_v52, %v3906_v35 }
 0x157   : > { %3217 = vmatmul.mubr.msk.f32.vlgmr.msra.gmra.mxu0 %vm398_vm0, %v525_v28  ;;  %v513_v23 = vmul.f32 %v3958_v38, %v499_v29 }
 0x158   : > { %v3553_v53 = vpop.eup %3552  ;;  %3219 = vmatprep.mubr.msk.f32.mxu0 %vm398_vm0, %v526_v11  ;;  %v514_v56 = vmul.f32 %v3958_v38, %v500_v36 }
 0x159   : > { %v3555_v57 = vpop.eup %3554  ;;  %v527_v58 = vadd.f32 %v3964_v46, %v513_v23  ;;  %v501_v59 = vmul.f32 %v3553_v53, %v3909_v21 }
 0x15a   : > { %v528_v17 = vadd.f32 %v3964_v46, %v514_v56  ;;  %v502_v60 = vmul.f32 %v3555_v57, %v3918_v47 }
 0x15b   : > { %3220 = vmatmul.mubr.msk.f32.gmra.mxu0 %vm398_vm0, %v527_v58  ;;  %v515_v35 = vmul.f32 %v3958_v38, %v501_v59 }
 0x15c   : > { %v3557_v61 = vpop.eup %3556  ;;  %3222 = vmatprep.mubr.msk.f32.mxu0 %vm398_vm0, %v528_v17  ;;  %v516_v62 = vmul.f32 %v3958_v38, %v502_v60 }
 0x15d   : > { %v529_v63 = vadd.f32 %v3964_v46, %v515_v35  ;;  %v503_v2 = vmul.f32 %v3557_v61, %v3921_v25 }
 0x15e   : > { %v530_v3 = vadd.f32 %v3964_v46, %v516_v62 }
 0x15f   : > { %3223 = vmatmul.mubr.msk.f32.gmra.mxu0 %vm398_vm0, %v529_v63  ;;  %v517_v21 = vmul.f32 %v3958_v38, %v503_v2 }
 0x160   : > { %3225 = vmatprep.mubr.msk.f32.mxu0 %vm398_vm0, %v530_v3 }
 0x161   : > { %v531_v47 = vadd.f32 %v3964_v46, %v517_v21 }
 0x163   : > { %3226 = vmatmul.mubr.msk.f32.gmra.mxu0 %vm398_vm0, %v531_v47 }
 0x207   : > { %v3238_v4 = vpop.f32.mrf.mxu1 }
 0x208   : > { %v4032_v5 = vadd.f32 %v3238_v4, %v2925_v44 }
 0x209   : > { %v893_v25 = vpop.f32.mrf.mxu1 }
 0x20a   : > { %v4034_v37 = vadd.f32 %v2925_v44, %v893_v25  ;;  %1161 = vrot.lane.b32.xlu1 %v4032_v5, %s3702_s27 }
 0x20b   : > { %v3241_v38 = vpop.f32.mrf.mxu1 }
 0x20c   : > { %v4038_v6 = vadd.f32 %v3241_v38, %v2925_v44  ;;  %1159 = vrot.lane.b32.xlu0 %v4034_v37, %s3702_s27 }
 0x20d   : > { %v903_v46 = vpop.f32.mrf.mxu1 }
 0x20e   : > { %v4042_v7 = vadd.f32 %v2925_v44, %v903_v46  ;;  %1165 = vrot.lane.b32.xlu1 %v4038_v6, %s3702_s27 }
 0x20f   : > { %v3244_v8 = vpop.f32.mrf.mxu1 }
 0x210   : > { %v4046_v9 = vadd.f32 %v3244_v8, %v2925_v44  ;;  %1163 = vrot.lane.b32.xlu0 %v4042_v7, %s3702_s27 }
 0x211   : > { %v913_v12 = vpop.f32.mrf.mxu1 }
 0x212   : > { %1169 = vrot.lane.b32.xlu1 %v4046_v9, %s3702_s27  ;;  %v4052_v14 = vadd.f32 %v2925_v44, %v913_v12 }
 0x213   : > { %v3247_v13 = vpop.f32.mrf.mxu1 }
 0x214   : > { %v4054_v45 = vadd.f32 %v3247_v13, %v2925_v44  ;;  %1354 = vrot.lane.b32.xlu0 %v4046_v9, %s3703_s28 }
 0x215   : > { %v923_v15 = vpop.f32.mrf.mxu1 }
 0x216   : > { %v4058_v18 = vadd.f32 %v2925_v44, %v923_v15  ;;  %1352 = vrot.lane.b32.xlu1 %v4052_v14, %s3703_s28  ;;  %3248 = vmatprep.subr.msk.mxu0 %vm932_vm1, %v4054_v45 }
 0x217   : > { %v3218_v19 = vpop.f32.mrf.mxu0  ;;  %3249 = vmatpush3.xpose.msk.msra.mxu0 %vm932_vm1, %v4054_v45 }
 0x218   : > { %1167 = vrot.lane.b32.xlu0 %v4052_v14, %s3702_s27  ;;  %3250 = vmatprep.subr.msk.mxu0 %vm932_vm1, %v4058_v18  ;;  %v4111_v32 = vadd.f32 %v3218_v19, %v2916_v54 }
 0x219   : > { %v753_v22 = vpop.f32.mrf.mxu0 }
 0x21a   : > { %v4073_v16 = vadd.f32 %v2916_v54, %v753_v22  ;;  %1358 = vrot.lane.b32.xlu1 %v4054_v45, %s3703_s28 }
 0x21b   : > { %3251 = vmatpush3.xpose.msk.msra.mxu0 %vm932_vm1, %v4058_v18  ;;  %v3221_v26 = vpop.f32.mrf.mxu0 }
 0x21c   : > { %1173 = vrot.lane.b32.xlu0 %v4054_v45, %s3702_s27  ;;  %3252 = vmatprep.subr.msk.mxu0 %vm932_vm1, %v4046_v9  ;;  %v4119_v55 = vadd.f32 %v3221_v26, %v2916_v54 }
 0x21d   : > { %3264 = vmatprep.mubr.msk.f32.mxu0 %vm932_vm1, %v4073_v16  ;;  %v763_v27 = vpop.f32.mrf.mxu0 }
 0x21e   : > { %1171 = vrot.lane.b32.xlu1 %v4058_v18, %s3702_s27  ;;  %v4113_v33 = vadd.f32 %v2916_v54, %v763_v27 }
 0x21f   : > { %3253 = vmatpush3.xpose.msk.msra.mxu0 %vm932_vm1, %v4046_v9  ;;  %v3224_v30 = vpop.f32.mrf.mxu0 }
 0x220   : > { %3254 = vmatprep.subr.msk.mxu0 %vm932_vm1, %v4052_v14  ;;  %v4127_v39 = vadd.f32 %v3224_v30, %v2916_v54 }
 0x221   : > { %v773_v31 = vpop.f32.mrf.mxu0 }
 0x222   : > { %1356 = vrot.lane.b32.xlu1 %v4058_v18, %s3703_s28  ;;  %v4121_v20 = vadd.f32 %v2916_v54, %v773_v31 }
 0x223   : > { %3255 = vmatpush3.xpose.msk.msra.mxu0 %vm932_vm1, %v4052_v14  ;;  %v3227_v34 = vpop.f32.mrf.mxu0 }
 0x224   : > { %3256 = vmatprep.subr.msk.mxu0 %vm932_vm1, %v4038_v6  ;;  %v4135_v41 = vadd.f32 %v3227_v34, %v2916_v54 }
 0x225   : > { %v783_v0 = vpop.f32.mrf.mxu0 }
 0x226   : > { %v4129_v40 = vadd.f32 %v2916_v54, %v783_v0 }
 0x227   : > { %3257 = vmatpush3.xpose.msk.msra.mxu0 %vm932_vm1, %v4038_v6 }
 0x228   : > { %3258 = vmatprep.subr.msk.mxu0 %vm932_vm1, %v4042_v7 }
 0x22b   : > { %3259 = vmatpush3.xpose.msk.msra.mxu0 %vm932_vm1, %v4042_v7 }
 0x22c   : > { %3260 = vmatprep.subr.msk.mxu0 %vm932_vm1, %v4032_v5 }
 0x22f   : > { %3261 = vmatpush3.xpose.msk.msra.mxu0 %vm932_vm1, %v4032_v5 }
 0x230   : > { %3262 = vmatprep.subr.msk.mxu0 %vm932_vm1, %v4034_v37 }
 0x233   : > { %3263 = vmatpush3.xpose.msk.msra.mxu0 %vm932_vm1, %v4034_v37 }
 0x236   : > { %3265 = vmatmul.mubr.msk.f32.vlgmr.msra.gmra.mxu0 %vm932_vm1, %v4111_v32 }
 0x237   : > { %3267 = vmatprep.mubr.msk.f32.mxu0 %vm932_vm1, %v4113_v33 }
 0x23a   : > { %3268 = vmatmul.mubr.msk.f32.gmra.mxu0 %vm932_vm1, %v4119_v55 }
 0x23b   : > { %3270 = vmatprep.mubr.msk.f32.mxu0 %vm932_vm1, %v4121_v20 }
 0x23e   : > { %3271 = vmatmul.mubr.msk.f32.gmra.mxu0 %vm932_vm1, %v4127_v39 }
 0x23f   : > { %3273 = vmatprep.mubr.msk.f32.mxu0 %vm932_vm1, %v4129_v40 }
 0x242   : > { %3274 = vmatmul.mubr.msk.f32.gmra.mxu0 %vm932_vm1, %v4135_v41 }
 0x27c   : > { %v1162_v42 = vpop.permute.xlu1 %1161 }
 0x27e   : > { %v1160_v43 = vpop.permute.xlu0 %1159 }
 0x280   : > { %v1166_v24 = vpop.permute.xlu1 %1165 }
 0x282   : > { %v1164_v48 = vpop.permute.xlu0 %1163 }
 0x284   : > { %v1170_v1 = vpop.permute.xlu1 %1169 }
 0x286   : > { %v4139_v49 = vpop.permute.xlu0 %1354 }
 0x288   : > { %v4141_v10 = vpop.permute.xlu1 %1352 }
 0x28a   : > { %v1168_v50 = vpop.permute.xlu0 %1167 }
 0x28c   : > { %v4143_v51 = vpop.permute.xlu1 %1358 }
 0x28e   : > { %v1174_v52 = vpop.permute.xlu0 %1173 }
 0x28f   : > { %3276 = vmatprep.subr.mxu1 %v1174_v52 }
 0x290   : > { %v1172_v28 = vpop.permute.xlu1 %1171  ;;  %3277 = vmatpush3.msra.mxu1 %v1174_v52 }
 0x291   : > { %3278 = vmatprep.subr.mxu1 %v1172_v28 }
 0x292   : > { %3279 = vmatpush3.msra.mxu1 %v1172_v28 }
 0x293   : > { %3280 = vmatprep.subr.mxu1 %v1170_v1 }
 0x294   : > { %3281 = vmatpush3.msra.mxu1 %v1170_v1  ;;  %v1357_v3 = vpop.permute.xlu1 %1356 }
 0x295   : > { %3282 = vmatprep.subr.mxu1 %v1168_v50 }
 0x296   : > { %3283 = vmatpush3.msra.mxu1 %v1168_v50 }
 0x297   : > { %3284 = vmatprep.subr.mxu1 %v1166_v24 }
 0x298   : > { %3285 = vmatpush3.msra.mxu1 %v1166_v24 }
 0x299   : > { %3286 = vmatprep.subr.mxu1 %v1164_v48 }
 0x29a   : > { %3287 = vmatpush3.msra.mxu1 %v1164_v48 }
 0x29b   : > { %3288 = vmatprep.subr.mxu1 %v1162_v42 }
 0x29c   : > { %3289 = vmatpush3.msra.mxu1 %v1162_v42 }
 0x29d   : > { %3290 = vmatprep.subr.mxu1 %v1160_v43 }
 0x29e   : > { %3291 = vmatpush3.msra.mxu1 %v1160_v43 }
 0x29f   : > { %3304 = vmatprep.subr.msk.mxu1 %vm932_vm1, %v4143_v51 }
 0x2f6   : > { %v3266_v29 = vpop.f32.mrf.mxu0 }
 0x2f7   : > { %v1090_v11 = vsel %vm1086_vm2, %v3266_v29, -inf }
 0x2f8   : > { %1091 = vmax.xlane.f32.xlu1 %v1090_v11  ;;  %v1047_v36 = vpop.f32.mrf.mxu0 }
 0x2f9   : > { %v1087_v23 = vsel %vm1086_vm2, %v1047_v36, -inf }
 0x2fa   : > { %1088 = vmax.xlane.f32.xlu0 %v1087_v23  ;;  %v4153_v53 = vpop.f32.mrf.mxu0 }
 0x2fb   : > { %v1096_v17 = vsel %vm1086_vm2, %v4153_v53, -inf }
 0x2fc   : > { %v4155_v56 = vpop.f32.mrf.mxu0 }
 0x2fd   : > { %v1093_v58 = vsel %vm1086_vm2, %v4155_v56, -inf }
 0x2fe   : > { %v4157_v57 = vpop.f32.mrf.mxu0 }
 0x2ff   : > { %v1102_v35 = vsel %vm1086_vm2, %v4157_v57, -inf }
 0x300   : > { %v4161_v59 = vpop.f32.mrf.mxu0 }
 0x301   : > { %v1099_v60 = vsel %vm1086_vm2, %v4161_v59, -inf }
 0x302   : > { %v4169_v61 = vpop.f32.mrf.mxu0 }
 0x303   : > { %v1108_v62 = vsel %vm1086_vm2, %v4169_v61, -inf }
 0x304   : > { %v4186_v63 = vpop.f32.mrf.mxu0 }
 0x305   : > { %v1105_v2 = vsel %vm1086_vm2, %v4186_v63, -inf }
 0x309   : > { %1348 = vrot.lane.b32.xlu1 %v4042_v7, %s3703_s28 }
 0x310   : > { %1350 = vrot.lane.b32.xlu0 %v4038_v6, %s3703_s28 }
 0x32d   : > { %1094 = vmax.xlane.f32.xlu1 %v1093_v58 }
 0x32f   : > { %1097 = vmax.xlane.f32.xlu0 %v1096_v17 }
 0x331   : > { %1100 = vmax.xlane.f32.xlu1 %v1099_v60 }
 0x333   : > { %1103 = vmax.xlane.f32.xlu0 %v1102_v35 }
 0x337   : > { %1109 = vmax.xlane.f32.xlu0 %v1108_v62 }
 0x342   : > { %1344 = vrot.lane.b32.xlu1 %v4034_v37, %s3703_s28 }
 0x34d   : > { %1346 = vrot.lane.b32.xlu0 %v4032_v5, %s3703_s28 }
 0x351   : > { %1328 = vrot.lane.b32.xlu0 %v4073_v16, %s3703_s28 }
 0x355   : > { %1332 = vrot.lane.b32.xlu0 %v4113_v33, %s3703_s28 }
 0x359   : > { %1336 = vrot.lane.b32.xlu0 %v4121_v20, %s3703_s28 }
 0x35d   : > { %1340 = vrot.lane.b32.xlu0 %v4129_v40, %s3703_s28 }
 0x361   : > { %1583 = vrot.lane.b32.xlu0 %v4054_v45, %s3704_s11 }
 0x365   : > { %1579 = vrot.lane.b32.xlu0 %v4046_v9, %s3704_s11 }
 0x366   : > { %1106 = vmax.xlane.f32.xlu1 %v1105_v2 }
 0x369   : > { %1577 = vrot.lane.b32.xlu0 %v4052_v14, %s3704_s11 }
 0x36d   : > { %1573 = vrot.lane.b32.xlu0 %v4042_v7, %s3704_s11 }
 0x371   : > { %1569 = vrot.lane.b32.xlu0 %v4034_v37, %s3704_s11 }
 0x375   : > { %1764 = vrot.lane.b32.xlu0 %v4046_v9, %s3705_s12 }
 0x377   : > { %1330 = vrot.lane.b32.xlu1 %v4111_v32, %s3703_s28 }
 0x37b   : > { %1334 = vrot.lane.b32.xlu1 %v4119_v55, %s3703_s28 }
 0x37f   : > { %1338 = vrot.lane.b32.xlu1 %v4127_v39, %s3703_s28 }
 0x381   : > { %v1092_v21 = vpop.xlane.xlu1 %1091 }
 0x382   : > { %v1112_v47 = vsub.f32 %v3266_v29, %v1092_v21 }
 0x383   : > { %1342 = vrot.lane.b32.xlu1 %v4135_v41, %s3703_s28  ;;  %v1089_v44 = vpop.xlane.xlu0 %1088 }
 0x384   : > { %v1111_v4 = vsub.f32 %v1047_v36, %v1089_v44  ;;  %v1121_v25 = vmul.f32 1.442695, %v1112_v47 }
 0x385   : > { %v1349_v13 = vpop.permute.xlu1 %1348 }
 0x386   : > { %v1119_v38 = vmul.f32 1.442695, %v1111_v4 }
 0x387   : > { %1581 = vrot.lane.b32.xlu1 %v4058_v18, %s3704_s11  ;;  %v1351_v12 = vpop.permute.xlu0 %1350 }
 0x388   : > { %3558 = vpow2.f32 %v1119_v38 }
 0x389   : > { %3560 = vpow2.f32 %v1121_v25 }
 0x38b   : > { %1575 = vrot.lane.b32.xlu1 %v4038_v6, %s3704_s11 }
 0x38f   : > { %1571 = vrot.lane.b32.xlu1 %v4032_v5, %s3704_s11 }
 0x393   : > { %1768 = vrot.lane.b32.xlu1 %v4054_v45, %s3705_s12 }
 0x395   : > { %v4209_v46 = vpop.eup %3558 }
 0x396   : > { %v4211_v8 = vpop.eup %3560  ;;  %3292 = vmatprep.mubr.msk.f32.mxu1 %vm1086_vm2, %v4209_v46 }
 0x397   : > { %1766 = vrot.lane.b32.xlu1 %v4058_v18, %s3705_s12  ;;  %3293 = vmatmul.mubr.msk.f32.vlgmr.msra.gmra.mxu1 %vm1086_vm2, %v4211_v8 }
 0x398   : > { %3305 = vmatpush3.xpose.msk.msra.mxu1 %vm932_vm1, %v4143_v51 }
 0x399   : > { %3306 = vmatprep.subr.msk.mxu1 %vm932_vm1, %v1357_v3 }
 0x39b   : > { %1762 = vrot.lane.b32.xlu1 %v4052_v14, %s3705_s12 }
 0x39c   : > { %3307 = vmatpush3.xpose.msk.msra.mxu1 %vm932_vm1, %v1357_v3 }
 0x39d   : > { %3308 = vmatprep.subr.msk.mxu1 %vm932_vm1, %v4139_v49 }
 0x3a0   : > { %3309 = vmatpush3.xpose.msk.msra.mxu1 %vm932_vm1, %v4139_v49 }
 0x3a1   : > { %3310 = vmatprep.subr.msk.mxu1 %vm932_vm1, %v4141_v10 }
 0x3a4   : > { %3311 = vmatpush3.xpose.msk.msra.mxu1 %vm932_vm1, %v4141_v10 }
 0x3a5   : > { %3312 = vmatprep.subr.msk.mxu1 %vm932_vm1, %v1351_v12 }
 0x3a8   : > { %3313 = vmatpush3.xpose.msk.msra.mxu1 %vm932_vm1, %v1351_v12 }
 0x3a9   : > { %3314 = vmatprep.subr.msk.mxu1 %vm932_vm1, %v1349_v13 }
 0x3ac   : > { %3315 = vmatpush3.xpose.msk.msra.mxu1 %vm932_vm1, %v1349_v13 }
 0x3b6   : > { %v1095_v15 = vpop.xlane.xlu1 %1094 }
 0x3b7   : > { %v1113_v19 = vsub.f32 %v4155_v56, %v1095_v15 }
 0x3b8   : > { %v1098_v54 = vpop.xlane.xlu0 %1097 }
 0x3b9   : > { %v1123_v22 = vmul.f32 1.442695, %v1113_v19  ;;  %v1114_v26 = vsub.f32 %v4153_v53, %v1098_v54 }
 0x3ba   : > { %v1101_v27 = vpop.xlane.xlu1 %1100 }
 0x3bb   : > { %3562 = vpow2.f32 %v1123_v22  ;;  %v1125_v30 = vmul.f32 1.442695, %v1114_v26  ;;  %v1115_v31 = vsub.f32 %v4161_v59, %v1101_v27 }
 0x3bc   : > { %v1104_v34 = vpop.xlane.xlu0 %1103 }
 0x3bd   : > { %3564 = vpow2.f32 %v1125_v30  ;;  %v1127_v0 = vmul.f32 1.442695, %v1115_v31  ;;  %v1116_v42 = vsub.f32 %v4157_v57, %v1104_v34 }
 0x3be   : > { %v1345_v1 = vpop.permute.xlu1 %1344 }
 0x3bf   : > { %3566 = vpow2.f32 %v1127_v0  ;;  %v1129_v43 = vmul.f32 1.442695, %v1116_v42 }
 0x3c0   : > { %v1110_v24 = vpop.xlane.xlu0 %1109 }
 0x3c1   : > { %3568 = vpow2.f32 %v1129_v43  ;;  %v1118_v23 = vsub.f32 %v4169_v61, %v1110_v24 }
 0x3c3   : > { %v1133_v57 = vmul.f32 1.442695, %v1118_v23 }
 0x3c4   : > { %v1347_v48 = vpop.permute.xlu0 %1346 }
 0x3c5   : > { %3316 = vmatprep.subr.msk.mxu1 %vm932_vm1, %v1347_v48 }
 0x3c6   : > { %3317 = vmatpush3.xpose.msk.msra.mxu1 %vm932_vm1, %v1347_v48 }
 0x3c7   : > { %3318 = vmatprep.subr.msk.mxu1 %vm932_vm1, %v1345_v1 }
 0x3c8   : > { %v4244_v49 = vpop.eup %3562  ;;  %v1329_v10 = vpop.permute.xlu0 %1328 }
 0x3c9   : > { %3295 = vmatprep.mubr.msk.f32.mxu1 %vm1086_vm2, %v4244_v49 }
 0x3ca   : > { %v4248_v50 = vpop.eup %3564  ;;  %3319 = vmatpush3.xpose.msk.msra.mxu1 %vm932_vm1, %v1345_v1 }
 0x3cb   : > { %3296 = vmatmul.mubr.msk.f32.gmra.mxu1 %vm1086_vm2, %v4248_v50 }
 0x3cc   : > { %v4253_v51 = vpop.eup %3566  ;;  %v1333_v52 = vpop.permute.xlu0 %1332 }
 0x3cd   : > { %3298 = vmatprep.mubr.msk.f32.mxu1 %vm1086_vm2, %v4253_v51 }
 0x3ce   : > { %v4257_v28 = vpop.eup %3568 }
 0x3cf   : > { %3299 = vmatmul.mubr.msk.f32.gmra.mxu1 %vm1086_vm2, %v4257_v28 }
 0x3d0   : > { %v1337_v29 = vpop.permute.xlu0 %1336 }
 0x3d4   : > { %v1341_v11 = vpop.permute.xlu0 %1340 }
 0x3d8   : > { %v1584_v36 = vpop.permute.xlu0 %1583 }
 0x3d9   : > { %3332 = vmatprep.subr.mxu0 %v1584_v36 }
 0x3da   : > { %3333 = vmatpush3.msra.mxu0 %v1584_v36 }
 0x3dc   : > { %v1580_v35 = vpop.permute.xlu0 %1579 }
 0x3e0   : > { %v1578_v61 = vpop.permute.xlu0 %1577 }
 0x3e4   : > { %v1574_v47 = vpop.permute.xlu0 %1573 }
 0x3e8   : > { %v1570_v4 = vpop.permute.xlu0 %1569 }
 0x3ef   : > { %v1107_v53 = vpop.xlane.xlu1 %1106 }
 0x3f0   : > { %v1117_v56 = vsub.f32 %v4186_v63, %v1107_v53 }
 0x3f2   : > { %v1131_v58 = vmul.f32 1.442695, %v1117_v56 }
 0x3f3   : > { %v1331_v59 = vpop.permute.xlu1 %1330 }
 0x3f4   : > { %3570 = vpow2.f32 %v1131_v58 }
 0x3f5   : > { %3572 = vpow2.f32 %v1133_v57  ;;  %v1765_v57 = vpop.permute.xlu0 %1764 }
 0x3f7   : > { %v1335_v17 = vpop.permute.xlu1 %1334 }
 0x3fb   : > { %v1339_v60 = vpop.permute.xlu1 %1338 }
 0x3ff   : > { %v1343_v62 = vpop.permute.xlu1 %1342 }
 0x401   : > { %v4263_v2 = vpop.eup %3570 }
 0x402   : > { %v4265_v3 = vpop.eup %3572  ;;  %3301 = vmatprep.mubr.msk.f32.mxu1 %vm1086_vm2, %v4263_v2 }
 0x403   : > { %v1582_v21 = vpop.permute.xlu1 %1581  ;;  %3302 = vmatmul.mubr.msk.f32.gmra.mxu1 %vm1086_vm2, %v4265_v3 }
 0x404   : > { %3320 = vmatprep.mubr.msk.f32.mxu1 %vm932_vm1, %v1329_v10  ;;  %3334 = vmatprep.subr.mxu0 %v1582_v21 }
 0x405   : > { %3335 = vmatpush3.msra.mxu0 %v1582_v21 }
 0x406   : > { %3336 = vmatprep.subr.mxu0 %v1580_v35 }
 0x407   : > { %v1576_v63 = vpop.permute.xlu1 %1575  ;;  %3321 = vmatmul.mubr.msk.f32.vlgmr.msra.gmra.mxu1 %vm932_vm1, %v1331_v59  ;;  %3337 = vmatpush3.msra.mxu0 %v1580_v35 }
 0x408   : > { %3323 = vmatprep.mubr.msk.f32.mxu1 %vm932_vm1, %v1333_v52  ;;  %3338 = vmatprep.subr.mxu0 %v1578_v61 }
 0x409   : > { %3339 = vmatpush3.msra.mxu0 %v1578_v61 }
 0x40a   : > { %3340 = vmatprep.subr.mxu0 %v1576_v63 }
 0x40b   : > { %v1572_v44 = vpop.permute.xlu1 %1571  ;;  %3324 = vmatmul.mubr.msk.f32.gmra.mxu1 %vm932_vm1, %v1335_v17  ;;  %3341 = vmatpush3.msra.mxu0 %v1576_v63 }
 0x40c   : > { %3326 = vmatprep.mubr.msk.f32.mxu1 %vm932_vm1, %v1337_v29  ;;  %3342 = vmatprep.subr.mxu0 %v1574_v47 }
 0x40d   : > { %3343 = vmatpush3.msra.mxu0 %v1574_v47 }
 0x40e   : > { %3344 = vmatprep.subr.mxu0 %v1572_v44 }
 0x40f   : > { %3327 = vmatmul.mubr.msk.f32.gmra.mxu1 %vm932_vm1, %v1339_v60  ;;  %3345 = vmatpush3.msra.mxu0 %v1572_v44  ;;  %v4278_v25 = vpop.permute.xlu1 %1768 }
 0x410   : > { %3329 = vmatprep.mubr.msk.f32.mxu1 %vm932_vm1, %v1341_v11  ;;  %3346 = vmatprep.subr.mxu0 %v1570_v4 }
 0x411   : > { %3347 = vmatpush3.msra.mxu0 %v1570_v4 }
 0x412   : > { %3360 = vmatprep.subr.msk.mxu0 %vm932_vm1, %v4278_v25 }
 0x413   : > { %3330 = vmatmul.mubr.msk.f32.gmra.mxu1 %vm932_vm1, %v1343_v62  ;;  %v1767_v53 = vpop.permute.xlu1 %1766 }
 0x417   : > { %v1763_v56 = vpop.permute.xlu1 %1762 }
 0x457   : > { %v4283_v38 = vpop.f32.mrf.mxu1 }
 0x459   : > { %v4285_v12 = vpop.f32.mrf.mxu1 }
 0x48b   : > { %v4287_v13 = vpop.f32.mrf.mxu1 }
 0x48d   : > { %v4289_v15 = vpop.f32.mrf.mxu1 }
 0x48f   : > { %v4291_v19 = vpop.f32.mrf.mxu1 }
 0x491   : > { %v4293_v54 = vpop.f32.mrf.mxu1 }
 0x4c3   : > { %v4295_v22 = vpop.f32.mrf.mxu1 }
 0x4c5   : > { %v4297_v26 = vpop.f32.mrf.mxu1 }
 0x4c7   : > { %v3322_v27 = vpop.f32.mrf.mxu1 }
 0x4c8   : > { %v1500_v30 = vsel %vm1086_vm2, %v3322_v27, -inf }
 0x4c9   : > { %1501 = vmax.xlane.f32.xlu1 %v1500_v30  ;;  %v1458_v31 = vpop.f32.mrf.mxu1 }
 0x4ca   : > { %v1497_v34 = vsel %vm1086_vm2, %v1458_v31, -inf }
 0x4cb   : > { %1498 = vmax.xlane.f32.xlu0 %v1497_v34  ;;  %v4305_v0 = vpop.f32.mrf.mxu1 }
 0x4cc   : > { %v1506_v1 = vsel %vm1086_vm2, %v4305_v0, -inf }
 0x4cd   : > { %v4307_v42 = vpop.f32.mrf.mxu1 }
 0x4ce   : > { %v1503_v24 = vsel %vm1086_vm2, %v4307_v42, -inf }
 0x4cf   : > { %v4309_v43 = vpop.f32.mrf.mxu1 }
 0x4d0   : > { %v1512_v52 = vsel %vm1086_vm2, %v4309_v43, -inf }
 0x4d1   : > { %v4313_v48 = vpop.f32.mrf.mxu1 }
 0x4d2   : > { %v1509_v10 = vsel %vm1086_vm2, %v4313_v48, -inf }
 0x4d3   : > { %v4321_v29 = vpop.f32.mrf.mxu1 }
 0x4d4   : > { %v1518_v11 = vsel %vm1086_vm2, %v4321_v29, -inf }
 0x4d5   : > { %v4338_v36 = vpop.f32.mrf.mxu1 }
 0x4d6   : > { %v1515_v23 = vsel %vm1086_vm2, %v4338_v36, -inf }
 0x4da   : > { %1758 = vrot.lane.b32.xlu1 %v4042_v7, %s3705_s12 }
 0x4e1   : > { %1760 = vrot.lane.b32.xlu0 %v4038_v6, %s3705_s12 }
 0x4fe   : > { %1504 = vmax.xlane.f32.xlu1 %v1503_v24 }
 0x500   : > { %1507 = vmax.xlane.f32.xlu0 %v1506_v1 }
 0x502   : > { %1510 = vmax.xlane.f32.xlu1 %v1509_v10 }
 0x504   : > { %1513 = vmax.xlane.f32.xlu0 %v1512_v52 }
 0x508   : > { %1519 = vmax.xlane.f32.xlu0 %v1518_v11 }
 0x513   : > { %1754 = vrot.lane.b32.xlu1 %v4034_v37, %s3705_s12 }
 0x51e   : > { %1756 = vrot.lane.b32.xlu0 %v4032_v5, %s3705_s12 }
 0x522   : > { %1738 = vrot.lane.b32.xlu0 %v4073_v16, %s3705_s12 }
 0x526   : > { %1742 = vrot.lane.b32.xlu0 %v4113_v33, %s3705_s12 }
 0x52a   : > { %1746 = vrot.lane.b32.xlu0 %v4121_v20, %s3705_s12 }
 0x52e   : > { %1750 = vrot.lane.b32.xlu0 %v4129_v40, %s3705_s12 }
 0x532   : > { %1993 = vrot.lane.b32.xlu0 %v4054_v45, %s3706_s14 }
 0x536   : > { %1989 = vrot.lane.b32.xlu0 %v4046_v9, %s3706_s14 }
 0x537   : > { %1516 = vmax.xlane.f32.xlu1 %v1515_v23 }
 0x53a   : > { %1987 = vrot.lane.b32.xlu0 %v4052_v14, %s3706_s14 }
 0x53e   : > { %1983 = vrot.lane.b32.xlu0 %v4042_v7, %s3706_s14 }
 0x542   : > { %1979 = vrot.lane.b32.xlu0 %v4034_v37, %s3706_s14 }
 0x546   : > { %2174 = vrot.lane.b32.xlu0 %v4046_v9, %s3707_s16 }
 0x548   : > { %1740 = vrot.lane.b32.xlu1 %v4111_v32, %s3705_s12 }
 0x54c   : > { %1744 = vrot.lane.b32.xlu1 %v4119_v55, %s3705_s12 }
 0x550   : > { %1748 = vrot.lane.b32.xlu1 %v4127_v39, %s3705_s12 }
 0x552   : > { %v1502_v58 = vpop.xlane.xlu1 %1501 }
 0x553   : > { %v1522_v59 = vsub.f32 %v3322_v27, %v1502_v58 }
 0x554   : > { %1752 = vrot.lane.b32.xlu1 %v4135_v41, %s3705_s12  ;;  %v1499_v17 = vpop.xlane.xlu0 %1498 }
 0x555   : > { %v1521_v60 = vsub.f32 %v1458_v31, %v1499_v17  ;;  %v1531_v35 = vmul.f32 1.442695, %v1522_v59 }
 0x556   : > { %v1759_v47 = vpop.permute.xlu1 %1758 }
 0x557   : > { %v1529_v62 = vmul.f32 1.442695, %v1521_v60 }
 0x558   : > { %1991 = vrot.lane.b32.xlu1 %v4058_v18, %s3706_s14  ;;  %v1761_v63 = vpop.permute.xlu0 %1760 }
 0x559   : > { %3574 = vpow2.f32 %v1529_v62 }
 0x55a   : > { %3576 = vpow2.f32 %v1531_v35 }
 0x55c   : > { %1985 = vrot.lane.b32.xlu1 %v4038_v6, %s3706_s14 }
 0x560   : > { %1981 = vrot.lane.b32.xlu1 %v4032_v5, %s3706_s14 }
 0x564   : > { %2178 = vrot.lane.b32.xlu1 %v4054_v45, %s3707_s16 }
 0x566   : > { %v4361_v61 = vpop.eup %3574 }
 0x567   : > { %v4363_v21 = vpop.eup %3576  ;;  %3348 = vmatprep.mubr.msk.f32.mxu0 %vm1086_vm2, %v4361_v61 }
 0x568   : > { %2176 = vrot.lane.b32.xlu1 %v4058_v18, %s3707_s16  ;;  %3349 = vmatmul.mubr.msk.f32.vlgmr.msra.gmra.mxu0 %vm1086_vm2, %v4363_v21 }
 0x569   : > { %3361 = vmatpush3.xpose.msk.msra.mxu0 %vm932_vm1, %v4278_v25 }
 0x56a   : > { %3362 = vmatprep.subr.msk.mxu0 %vm932_vm1, %v1767_v53 }
 0x56c   : > { %2172 = vrot.lane.b32.xlu1 %v4052_v14, %s3707_s16 }
 0x56d   : > { %3363 = vmatpush3.xpose.msk.msra.mxu0 %vm932_vm1, %v1767_v53 }
 0x56e   : > { %3364 = vmatprep.subr.msk.mxu0 %vm932_vm1, %v1765_v57 }
 0x571   : > { %3365 = vmatpush3.xpose.msk.msra.mxu0 %vm932_vm1, %v1765_v57 }
 0x572   : > { %3366 = vmatprep.subr.msk.mxu0 %vm932_vm1, %v1763_v56 }
 0x575   : > { %3367 = vmatpush3.xpose.msk.msra.mxu0 %vm932_vm1, %v1763_v56 }
 0x576   : > { %3368 = vmatprep.subr.msk.mxu0 %vm932_vm1, %v1761_v63 }
 0x579   : > { %3369 = vmatpush3.xpose.msk.msra.mxu0 %vm932_vm1, %v1761_v63 }
 0x57a   : > { %3370 = vmatprep.subr.msk.mxu0 %vm932_vm1, %v1759_v47 }
 0x57d   : > { %3371 = vmatpush3.xpose.msk.msra.mxu0 %vm932_vm1, %v1759_v47 }
 0x587   : > { %v1505_v44 = vpop.xlane.xlu1 %1504 }
 0x588   : > { %v1523_v4 = vsub.f32 %v4307_v42, %v1505_v44 }
 0x589   : > { %v1508_v25 = vpop.xlane.xlu0 %1507 }
 0x58a   : > { %v1533_v27 = vmul.f32 1.442695, %v1523_v4  ;;  %v1524_v30 = vsub.f32 %v4305_v0, %v1508_v25 }
 0x58b   : > { %v1511_v31 = vpop.xlane.xlu1 %1510 }
 0x58c   : > { %3578 = vpow2.f32 %v1533_v27  ;;  %v1535_v34 = vmul.f32 1.442695, %v1524_v30  ;;  %v1525_v24 = vsub.f32 %v4313_v48, %v1511_v31 }
 0x58d   : > { %v1514_v1 = vpop.xlane.xlu0 %1513 }
 0x58e   : > { %3580 = vpow2.f32 %v1535_v34  ;;  %v1537_v10 = vmul.f32 1.442695, %v1525_v24  ;;  %v1526_v52 = vsub.f32 %v4309_v43, %v1514_v1 }
 0x58f   : > { %v1755_v42 = vpop.permute.xlu1 %1754 }
 0x590   : > { %3582 = vpow2.f32 %v1537_v10  ;;  %v1539_v11 = vmul.f32 1.442695, %v1526_v52 }
 0x591   : > { %v1520_v23 = vpop.xlane.xlu0 %1519 }
 0x592   : > { %3584 = vpow2.f32 %v1539_v11  ;;  %v1528_v35 = vsub.f32 %v4321_v29, %v1520_v23 }
 0x594   : > { %v1543_v47 = vmul.f32 1.442695, %v1528_v35 }
 0x595   : > { %v1757_v53 = vpop.permute.xlu0 %1756 }
 0x596   : > { %3372 = vmatprep.subr.msk.mxu0 %vm932_vm1, %v1757_v53 }
 0x597   : > { %3373 = vmatpush3.xpose.msk.msra.mxu0 %vm932_vm1, %v1757_v53 }
 0x598   : > { %3374 = vmatprep.subr.msk.mxu0 %vm932_vm1, %v1755_v42 }
 0x599   : > { %v4392_v0 = vpop.eup %3578  ;;  %v1739_v48 = vpop.permute.xlu0 %1738 }
 0x59a   : > { %3351 = vmatprep.mubr.msk.f32.mxu0 %vm1086_vm2, %v4392_v0 }
 0x59b   : > { %v4396_v56 = vpop.eup %3580  ;;  %3375 = vmatpush3.xpose.msk.msra.mxu0 %vm932_vm1, %v1755_v42 }
 0x59c   : > { %3352 = vmatmul.mubr.msk.f32.gmra.mxu0 %vm1086_vm2, %v4396_v56 }
 0x59d   : > { %v4401_v43 = vpop.eup %3582  ;;  %v1743_v57 = vpop.permute.xlu0 %1742 }
 0x59e   : > { %3354 = vmatprep.mubr.msk.f32.mxu0 %vm1086_vm2, %v4401_v43 }
 0x59f   : > { %v4405_v58 = vpop.eup %3584 }
 0x5a0   : > { %3355 = vmatmul.mubr.msk.f32.gmra.mxu0 %vm1086_vm2, %v4405_v58 }
 0x5a1   : > { %v1747_v59 = vpop.permute.xlu0 %1746 }
 0x5a5   : > { %v1751_v17 = vpop.permute.xlu0 %1750 }
 0x5a9   : > { %v1994_v60 = vpop.permute.xlu0 %1993 }
 0x5aa   : > { %3388 = vmatprep.subr.mxu1 %v1994_v60 }
 0x5ab   : > { %3389 = vmatpush3.msra.mxu1 %v1994_v60 }
 0x5ad   : > { %v1990_v30 = vpop.permute.xlu0 %1989 }
 0x5b1   : > { %v1988_v29 = vpop.permute.xlu0 %1987 }
 0x5b5   : > { %v1984_v10 = vpop.permute.xlu0 %1983 }
 0x5b9   : > { %v1980_v11 = vpop.permute.xlu0 %1979 }
 0x5c0   : > { %v1517_v62 = vpop.xlane.xlu1 %1516 }
 0x5c1   : > { %v1527_v63 = vsub.f32 %v4338_v36, %v1517_v62 }
 0x5c3   : > { %v1541_v44 = vmul.f32 1.442695, %v1527_v63 }
 0x5c4   : > { %v1741_v4 = vpop.permute.xlu1 %1740 }
 0x5c5   : > { %3586 = vpow2.f32 %v1541_v44 }
 0x5c6   : > { %3588 = vpow2.f32 %v1543_v47 }
 0x5c8   : > { %v1745_v25 = vpop.permute.xlu1 %1744 }
 0x5cc   : > { %v1749_v27 = vpop.permute.xlu1 %1748 }
 0x5d0   : > { %v1753_v31 = vpop.permute.xlu1 %1752 }
 0x5d2   : > { %v4411_v34 = vpop.eup %3586 }
 0x5d3   : > { %v4413_v24 = vpop.eup %3588  ;;  %3357 = vmatprep.mubr.msk.f32.mxu0 %vm1086_vm2, %v4411_v34 }
 0x5d4   : > { %v1992_v1 = vpop.permute.xlu1 %1991  ;;  %3358 = vmatmul.mubr.msk.f32.gmra.mxu0 %vm1086_vm2, %v4413_v24 }
 0x5d5   : > { %3376 = vmatprep.mubr.msk.f32.mxu0 %vm932_vm1, %v1739_v48  ;;  %3390 = vmatprep.subr.mxu1 %v1992_v1 }
 0x5d6   : > { %3391 = vmatpush3.msra.mxu1 %v1992_v1 }
 0x5d7   : > { %3392 = vmatprep.subr.mxu1 %v1990_v30 }
 0x5d8   : > { %v1986_v36 = vpop.permute.xlu1 %1985  ;;  %3377 = vmatmul.mubr.msk.f32.vlgmr.msra.gmra.mxu0 %vm932_vm1, %v1741_v4  ;;  %3393 = vmatpush3.msra.mxu1 %v1990_v30 }
 0x5d9   : > { %3379 = vmatprep.mubr.msk.f32.mxu0 %vm932_vm1, %v1743_v57  ;;  %3394 = vmatprep.subr.mxu1 %v1988_v29 }
 0x5da   : > { %3395 = vmatpush3.msra.mxu1 %v1988_v29 }
 0x5db   : > { %3396 = vmatprep.subr.mxu1 %v1986_v36 }
 0x5dc   : > { %v1982_v52 = vpop.permute.xlu1 %1981  ;;  %3380 = vmatmul.mubr.msk.f32.gmra.mxu0 %vm932_vm1, %v1745_v25  ;;  %3397 = vmatpush3.msra.mxu1 %v1986_v36 }
 0x5dd   : > { %3382 = vmatprep.mubr.msk.f32.mxu0 %vm932_vm1, %v1747_v59  ;;  %3398 = vmatprep.subr.mxu1 %v1984_v10 }
 0x5de   : > { %3399 = vmatpush3.msra.mxu1 %v1984_v10 }
 0x5df   : > { %3400 = vmatprep.subr.mxu1 %v1982_v52 }
 0x5e0   : > { %3383 = vmatmul.mubr.msk.f32.gmra.mxu0 %vm932_vm1, %v1749_v27  ;;  %3401 = vmatpush3.msra.mxu1 %v1982_v52  ;;  %v4426_v23 = vpop.permute.xlu1 %2178 }
 0x5e1   : > { %3385 = vmatprep.mubr.msk.f32.mxu0 %vm932_vm1, %v1751_v17  ;;  %3402 = vmatprep.subr.mxu1 %v1980_v11 }
 0x5e2   : > { %3403 = vmatpush3.msra.mxu1 %v1980_v11 }
 0x5e3   : > { %3416 = vmatprep.subr.msk.mxu1 %vm932_vm1, %v4426_v23 }
 0x5e4   : > { %3386 = vmatmul.mubr.msk.f32.gmra.mxu0 %vm932_vm1, %v1753_v31 }
 0x628   : > { %v4431_v53 = vpop.f32.mrf.mxu0 }
 0x62a   : > { %v4433_v42 = vpop.f32.mrf.mxu0 }
 0x65c   : > { %v4435_v48 = vpop.f32.mrf.mxu0 }
 0x65e   : > { %v4437_v57 = vpop.f32.mrf.mxu0 }
 0x660   : > { %v4439_v59 = vpop.f32.mrf.mxu0 }
 0x662   : > { %v4441_v17 = vpop.f32.mrf.mxu0 }
 0x694   : > { %v4443_v60 = vpop.f32.mrf.mxu0 }
 0x696   : > { %v4445_v35 = vpop.f32.mrf.mxu0 }
 0x698   : > { %v3378_v62 = vpop.f32.mrf.mxu0 }
 0x699   : > { %v1910_v63 = vsel %vm1086_vm2, %v3378_v62, -inf }
 0x69a   : > { %1911 = vmax.xlane.f32.xlu1 %v1910_v63  ;;  %v1868_v47 = vpop.f32.mrf.mxu0 }
 0x69b   : > { %v1907_v44 = vsel %vm1086_vm2, %v1868_v47, -inf }
 0x69c   : > { %1908 = vmax.xlane.f32.xlu0 %v1907_v44  ;;  %v4453_v4 = vpop.f32.mrf.mxu0 }
 0x69d   : > { %v1916_v29 = vsel %vm1086_vm2, %v4453_v4, -inf }
 0x69e   : > { %v4455_v25 = vpop.f32.mrf.mxu0 }
 0x69f   : > { %v1913_v30 = vsel %vm1086_vm2, %v4455_v25, -inf }
 0x6a0   : > { %v4457_v27 = vpop.f32.mrf.mxu0 }
 0x6a1   : > { %v1922_v36 = vsel %vm1086_vm2, %v4457_v27, -inf }
 0x6a2   : > { %v4461_v31 = vpop.f32.mrf.mxu0 }
 0x6a3   : > { %v1919_v1 = vsel %vm1086_vm2, %v4461_v31, -inf }
 0x6a4   : > { %v4469_v10 = vpop.f32.mrf.mxu0 }
 0x6a5   : > { %v1928_v52 = vsel %vm1086_vm2, %v4469_v10, -inf }
 0x6a6   : > { %v4487_v11 = vpop.f32.mrf.mxu0 }
 0x6ab   : > { %2168 = vrot.lane.b32.xlu1 %v4042_v7, %s3707_s16 }
 0x6b2   : > { %2170 = vrot.lane.b32.xlu0 %v4038_v6, %s3707_s16 }
 0x6cf   : > { %1914 = vmax.xlane.f32.xlu1 %v1913_v30 }
 0x6d1   : > { %1917 = vmax.xlane.f32.xlu0 %v1916_v29 }
 0x6d3   : > { %1920 = vmax.xlane.f32.xlu1 %v1919_v1 }
 0x6d5   : > { %1923 = vmax.xlane.f32.xlu0 %v1922_v36 }
 0x6d9   : > { %1929 = vmax.xlane.f32.xlu0 %v1928_v52 }
 0x6e4   : > { %2164 = vrot.lane.b32.xlu1 %v4034_v37, %s3707_s16 }
 0x6ef   : > { %2166 = vrot.lane.b32.xlu0 %v4032_v5, %s3707_s16 }
 0x6f3   : > { %2148 = vrot.lane.b32.xlu0 %v4073_v16, %s3707_s16  ;;  %v1925_v16 = vsel %vm1086_vm2, %v4487_v11, -inf }
 0x6f7   : > { %2152 = vrot.lane.b32.xlu0 %v4113_v33, %s3707_s16  ;;  %v2177_v33 = vpop.permute.xlu1 %2176 }
 0x6fb   : > { %2156 = vrot.lane.b32.xlu0 %v4121_v20, %s3707_s16  ;;  %v2173_v20 = vpop.permute.xlu1 %2172 }
 0x6ff   : > { %2160 = vrot.lane.b32.xlu0 %v4129_v40, %s3707_s16  ;;  %v2175_v40 = vpop.permute.xlu0 %2174 }
 0x703   : > { %2403 = vrot.lane.b32.xlu0 %v4054_v45, %s3708_s17 }
 0x707   : > { %2395 = vrot.lane.b32.xlu0 %v4038_v6, %s3708_s17 }
 0x708   : > { %1926 = vmax.xlane.f32.xlu1 %v1925_v16 }
 0x719   : > { %2150 = vrot.lane.b32.xlu1 %v4111_v32, %s3707_s16 }
 0x71d   : > { %2154 = vrot.lane.b32.xlu1 %v4119_v55, %s3707_s16 }
 0x721   : > { %2158 = vrot.lane.b32.xlu1 %v4127_v39, %s3707_s16 }
 0x723   : > { %v1912_v45 = vpop.xlane.xlu1 %1911 }
 0x724   : > { %v1932_v63 = vsub.f32 %v3378_v62, %v1912_v45 }
 0x725   : > { %2162 = vrot.lane.b32.xlu1 %v4135_v41, %s3707_s16  ;;  %v1909_v6 = vpop.xlane.xlu0 %1908  ;;  %s4774_s16 = scalar_lea.vmem %s4813_s10, %s3775_s15 }
 0x726   : > { %v1931_v44 = vsub.f32 %v1868_v47, %v1909_v6  ;;  %v1941_v30 = vmul.f32 1.442695, %v1932_v63 }
 0x728   : > { %v1939_v29 = vmul.f32 1.442695, %v1931_v44 }
 0x729   : > { %2401 = vrot.lane.b32.xlu1 %v4058_v18, %s3708_s17 }
 0x72a   : > { %3590 = vpow2.f32 %v1939_v29 }
 0x72b   : > { %3592 = vpow2.f32 %v1941_v30 }
 0x72d   : > { %2399 = vrot.lane.b32.xlu1 %v4046_v9, %s3708_s17  ;;  %v2169_v9 = vpop.permute.xlu1 %2168 }
 0x731   : > { %2397 = vrot.lane.b32.xlu1 %v4052_v14, %s3708_s17 }
 0x735   : > { %2393 = vrot.lane.b32.xlu1 %v4042_v7, %s3708_s17  ;;  %v2171_v7 = vpop.permute.xlu0 %2170 }
 0x737   : > { %v4509_v32 = vpop.eup %3590 }
 0x738   : > { %v4511_v55 = vpop.eup %3592  ;;  %3404 = vmatprep.mubr.msk.f32.mxu1 %vm1086_vm2, %v4509_v32 }
 0x739   : > { %3405 = vmatmul.mubr.msk.f32.vlgmr.msra.gmra.mxu1 %vm1086_vm2, %v4511_v55 }
 0x73a   : > { %3417 = vmatpush3.xpose.msk.msra.mxu1 %vm932_vm1, %v4426_v23 }
 0x73b   : > { %3418 = vmatprep.subr.msk.mxu1 %vm932_vm1, %v2177_v33 }
 0x73e   : > { %3419 = vmatpush3.xpose.msk.msra.mxu1 %vm932_vm1, %v2177_v33 }
 0x73f   : > { %3420 = vmatprep.subr.msk.mxu1 %vm932_vm1, %v2175_v40 }
 0x742   : > { %3421 = vmatpush3.xpose.msk.msra.mxu1 %vm932_vm1, %v2175_v40 }
 0x743   : > { %3422 = vmatprep.subr.msk.mxu1 %vm932_vm1, %v2173_v20 }
 0x746   : > { %3423 = vmatpush3.xpose.msk.msra.mxu1 %vm932_vm1, %v2173_v20 }
 0x747   : > { %3424 = vmatprep.subr.msk.mxu1 %vm932_vm1, %v2171_v7 }
 0x74a   : > { %3425 = vmatpush3.xpose.msk.msra.mxu1 %vm932_vm1, %v2171_v7 }
 0x74b   : > { %3426 = vmatprep.subr.msk.mxu1 %vm932_vm1, %v2169_v9 }
 0x74e   : > { %3427 = vmatpush3.xpose.msk.msra.mxu1 %vm932_vm1, %v2169_v9 }
 0x758   : > { %v1915_v14 = vpop.xlane.xlu1 %1914 }
 0x759   : > { %v1933_v18 = vsub.f32 %v4455_v25, %v1915_v14 }
 0x75a   : > { %v1918_v39 = vpop.xlane.xlu0 %1917 }
 0x75b   : > { %v1943_v41 = vmul.f32 1.442695, %v1933_v18  ;;  %v1934_v23 = vsub.f32 %v4453_v4, %v1918_v39 }
 0x75c   : > { %v1921_v62 = vpop.xlane.xlu1 %1920 }
 0x75d   : > { %3594 = vpow2.f32 %v1943_v41  ;;  %v1945_v47 = vmul.f32 1.442695, %v1934_v23  ;;  %v1935_v1 = vsub.f32 %v4461_v31, %v1921_v62 }
 0x75e   : > { %v1924_v36 = vpop.xlane.xlu0 %1923 }
 0x75f   : > { %3596 = vpow2.f32 %v1945_v47  ;;  %v1947_v52 = vmul.f32 1.442695, %v1935_v1  ;;  %v1936_v16 = vsub.f32 %v4457_v27, %v1924_v36 }
 0x760   : > { %v2165_v25 = vpop.permute.xlu1 %2164 }
 0x761   : > { %3598 = vpow2.f32 %v1947_v52  ;;  %v1949_v33 = vmul.f32 1.442695, %v1936_v16 }
 0x762   : > { %v1930_v20 = vpop.xlane.xlu0 %1929 }
 0x763   : > { %3600 = vpow2.f32 %v1949_v33  ;;  %v1938_v7 = vsub.f32 %v4469_v10, %v1930_v20 }
 0x765   : > { %v1953_v18 = vmul.f32 1.442695, %v1938_v7 }
 0x766   : > { %v2167_v40 = vpop.permute.xlu0 %2166 }
 0x767   : > { %3428 = vmatprep.subr.msk.mxu1 %vm932_vm1, %v2167_v40 }
 0x768   : > { %3429 = vmatpush3.xpose.msk.msra.mxu1 %vm932_vm1, %v2167_v40 }
 0x769   : > { %3430 = vmatprep.subr.msk.mxu1 %vm932_vm1, %v2165_v25 }
 0x76a   : > { %v4536_v4 = vpop.eup %3594  ;;  %v2149_v31 = vpop.permute.xlu0 %2148 }
 0x76b   : > { %3407 = vmatprep.mubr.msk.f32.mxu1 %vm1086_vm2, %v4536_v4 }
 0x76c   : > { %v4540_v45 = vpop.eup %3596  ;;  %3431 = vmatpush3.xpose.msk.msra.mxu1 %vm932_vm1, %v2165_v25 }
 0x76d   : > { %3408 = vmatmul.mubr.msk.f32.gmra.mxu1 %vm1086_vm2, %v4540_v45 }
 0x76e   : > { %v4545_v27 = vpop.eup %3598  ;;  %v2153_v63 = vpop.permute.xlu0 %2152 }
 0x76f   : > { %3410 = vmatprep.mubr.msk.f32.mxu1 %vm1086_vm2, %v4545_v27 }
 0x770   : > { %v4549_v6 = vpop.eup %3600 }
 0x771   : > { %3411 = vmatmul.mubr.msk.f32.gmra.mxu1 %vm1086_vm2, %v4549_v6 }
 0x772   : > { %v2157_v44 = vpop.permute.xlu0 %2156 }
 0x776   : > { %v2161_v30 = vpop.permute.xlu0 %2160 }
 0x77a   : > { %v2404_v29 = vpop.permute.xlu0 %2403 }
 0x77b   : > { %3444 = vmatprep.subr.mxu0 %v2404_v29  ;;  %3492 = vmatprep.subr.mxu1 %v2404_v29 }
 0x77c   : > { %3445 = vmatpush3.msra.mxu0 %v2404_v29 }
 0x77e   : > { %v2396_v16 = vpop.permute.xlu0 %2395 }
 0x791   : > { %v1927_v9 = vpop.xlane.xlu1 %1926 }
 0x792   : > { %v1937_v14 = vsub.f32 %v4487_v11, %v1927_v9 }
 0x794   : > { %v1951_v39 = vmul.f32 1.442695, %v1937_v14 }
 0x795   : > { %v2151_v41 = vpop.permute.xlu1 %2150 }
 0x796   : > { %3602 = vpow2.f32 %v1951_v39 }
 0x797   : > { %3604 = vpow2.f32 %v1953_v18 }
 0x799   : > { %v2155_v23 = vpop.permute.xlu1 %2154 }
 0x79d   : > { %v2159_v62 = vpop.permute.xlu1 %2158 }
 0x7a1   : > { %v2163_v47 = vpop.permute.xlu1 %2162 }
 0x7a3   : > { %v4555_v1 = vpop.eup %3602 }
 0x7a4   : > { %v4557_v36 = vpop.eup %3604  ;;  %3413 = vmatprep.mubr.msk.f32.mxu1 %vm1086_vm2, %v4555_v1 }
 0x7a5   : > { %v2402_v52 = vpop.permute.xlu1 %2401  ;;  %3414 = vmatmul.mubr.msk.f32.gmra.mxu1 %vm1086_vm2, %v4557_v36 }
 0x7a6   : > { %3432 = vmatprep.mubr.msk.f32.mxu1 %vm932_vm1, %v2149_v31  ;;  %3446 = vmatprep.subr.mxu0 %v2402_v52 }
 0x7a7   : > { %3447 = vmatpush3.msra.mxu0 %v2402_v52 }
 0x7a9   : > { %v2400_v10 = vpop.permute.xlu1 %2399  ;;  %3433 = vmatmul.mubr.msk.f32.vlgmr.msra.gmra.mxu1 %vm932_vm1, %v2151_v41 }
 0x7aa   : > { %3500 = vmatpush3.msra.mxu1 %v2404_v29  ;;  %3435 = vmatprep.mubr.msk.f32.mxu1 %vm932_vm1, %v2153_v63 }
 0x7ab   : > { %3493 = vmatprep.subr.mxu1 %v2402_v52  ;;  %3448 = vmatprep.subr.mxu0 %v2400_v10 }
 0x7ac   : > { %3501 = vmatpush3.msra.mxu1 %v2402_v52  ;;  %3449 = vmatpush3.msra.mxu0 %v2400_v10 }
 0x7ad   : > { %3494 = vmatprep.subr.mxu1 %v2400_v10  ;;  %v2398_v11 = vpop.permute.xlu1 %2397  ;;  %3436 = vmatmul.mubr.msk.f32.gmra.mxu1 %vm932_vm1, %v2155_v23 }
 0x7ae   : > { %3502 = vmatpush3.msra.mxu1 %v2400_v10  ;;  %3438 = vmatprep.mubr.msk.f32.mxu1 %vm932_vm1, %v2157_v44 }
 0x7af   : > { %3450 = vmatprep.subr.mxu0 %v2398_v11  ;;  %3495 = vmatprep.subr.mxu1 %v2398_v11 }
 0x7b0   : > { %3451 = vmatpush3.msra.mxu0 %v2398_v11  ;;  %3503 = vmatpush3.msra.mxu1 %v2398_v11 }
 0x7b1   : > { %3452 = vmatprep.subr.mxu0 %v2396_v16  ;;  %3496 = vmatprep.subr.mxu1 %v2396_v16  ;;  %v2394_v33 = vpop.permute.xlu1 %2393 }
 0x7b2   : > { %3439 = vmatmul.mubr.msk.f32.gmra.mxu1 %vm932_vm1, %v2159_v62  ;;  %3453 = vmatpush3.msra.mxu0 %v2396_v16 }
 0x7b3   : > { %3504 = vmatpush3.msra.mxu1 %v2396_v16  ;;  %3441 = vmatprep.mubr.msk.f32.mxu1 %vm932_vm1, %v2161_v30 }
 0x7b4   : > { %3454 = vmatprep.subr.mxu0 %v2394_v33  ;;  %3497 = vmatprep.subr.mxu1 %v2394_v33 }
 0x7b5   : > { %3455 = vmatpush3.msra.mxu0 %v2394_v33  ;;  %3505 = vmatpush3.msra.mxu1 %v2394_v33 }
 0x7b6   : > { %3442 = vmatmul.mubr.msk.f32.gmra.mxu1 %vm932_vm1, %v2163_v47 }
 0x7f9   : > { %v4571_v20 = vpop.f32.mrf.mxu1 }
 0x7fb   : > { %v4573_v40 = vpop.f32.mrf.mxu1 }
 0x82d   : > { %v4575_v25 = vpop.f32.mrf.mxu1 }
 0x82f   : > { %v4577_v31 = vpop.f32.mrf.mxu1 }
 0x831   : > { %v4579_v63 = vpop.f32.mrf.mxu1 }
 0x833   : > { %v4581_v44 = vpop.f32.mrf.mxu1 }
 0x865   : > { %v4583_v29 = vpop.f32.mrf.mxu1 }
 0x867   : > { %v4585_v30 = vpop.f32.mrf.mxu1 }
 0x869   : > { %v3434_v7 = vpop.f32.mrf.mxu1 }
 0x86a   : > { %v2320_v9 = vsel %vm1086_vm2, %v3434_v7, -inf }
 0x86b   : > { %2321 = vmax.xlane.f32.xlu1 %v2320_v9  ;;  %v2278_v14 = vpop.f32.mrf.mxu1 }
 0x86c   : > { %v2317_v18 = vsel %vm1086_vm2, %v2278_v14, -inf }
 0x86d   : > { %2318 = vmax.xlane.f32.xlu0 %v2317_v18  ;;  %v3437_v39 = vpop.f32.mrf.mxu1 }
 0x86e   : > { %v2326_v23 = vsel %vm1086_vm2, %v3437_v39, -inf }
 0x86f   : > { %v4589_v41 = vpop.f32.mrf.mxu1 }
 0x870   : > { %v2323_v10 = vsel %vm1086_vm2, %v4589_v41, -inf }
 0x871   : > { %2327 = vmax.xlane.f32.xlu0 %v2326_v23  ;;  %v1548_v23 = vsel %vm1086_vm2, %v4363_v21, 0.0  ;;  %v1958_v21 = vsel %vm1086_vm2, %v4511_v55, 0.0  ;;  %v1976_v55 = vsel %vm1086_vm2, %v4557_v36, 0.0 }
 0x872   : > { %v4592_v62 = vpop.f32.mrf.mxu1 }
 0x873   : > { %v2332_v47 = vsel %vm1086_vm2, %v4592_v62, -inf }
 0x874   : > { %2333 = vmax.xlane.f32.xlu1 %v2332_v47  ;;  %v4596_v52 = vpop.f32.mrf.mxu1  ;;  %v1554_v47 = vsel %vm1086_vm2, %v4396_v56, 0.0  ;;  %v1551_v56 = vsel %vm1086_vm2, %v4392_v0, 0.0  ;;  %v1967_v0 = vsel %vm1086_vm2, %v4545_v27, 0.0 }
 0x875   : > { %2324 = vmax.xlane.f32.xlu0 %v2323_v10  ;;  %v2329_v33 = vsel %vm1086_vm2, %v4596_v52, -inf  ;;  %v1545_v10 = vsel %vm1086_vm2, %v4361_v61, 0.0  ;;  %v1970_v61 = vsel %vm1086_vm2, %v4549_v6, 0.0 }
 0x876   : > { %v4600_v11 = vpop.f32.mrf.mxu1 }
 0x877   : > { %v2338_v16 = vsel %vm1086_vm2, %v4600_v11, -inf }
 0x878   : > { %2339 = vmax.xlane.f32.xlu1 %v2338_v16  ;;  %v4606_v9 = vpop.f32.mrf.mxu1  ;;  %v1964_v16 = vsel %vm1086_vm2, %v4540_v45, 0.0  ;;  %v1557_v45 = vsel %vm1086_vm2, %v4401_v43, 0.0 }
 0x879   : > { %2330 = vmax.xlane.f32.xlu0 %v2329_v33  ;;  %v2335_v18 = vsel %vm1086_vm2, %v4606_v9, -inf }
 0x87d   : > { %2336 = vmax.xlane.f32.xlu0 %v2335_v18 }
 0x889   : > { %2389 = vrot.lane.b32.xlu1 %v4034_v37, %s3708_s17  ;;  %v1955_v37 = vsel %vm1086_vm2, %v4509_v32, 0.0  ;;  %v1566_v32 = vsel %vm1086_vm2, %v4413_v24, 0.0  ;;  %v1563_v24 = vsel %vm1086_vm2, %v4411_v34, 0.0 }
 0x893   : > { %2391 = vrot.lane.b32.xlu0 %v4032_v5, %s3708_s17  ;;  %v1560_v5 = vsel %vm1086_vm2, %v4405_v58, 0.0  ;;  %v1961_v58 = vsel %vm1086_vm2, %v4536_v4, 0.0  ;;  %v1973_v4 = vsel %vm1086_vm2, %v4555_v1, 0.0 }
 0x8ad   : > { %1549 = vadd.xlane.f32.xlu1 %v1548_v23 }
 0x8b1   : > { %1555 = vadd.xlane.f32.xlu1 %v1554_v47 }
 0x8b2   : > { %1546 = vadd.xlane.f32.xlu0 %v1545_v10 }
 0x8b5   : > { %1965 = vadd.xlane.f32.xlu1 %v1964_v16 }
 0x8b6   : > { %1956 = vadd.xlane.f32.xlu0 %v1955_v37 }
 0x8b9   : > { %1561 = vadd.xlane.f32.xlu1 %v1560_v5 }
 0x8ba   : > { %1959 = vadd.xlane.f32.xlu0 %v1958_v21 }
 0x8bd   : > { %1971 = vadd.xlane.f32.xlu1 %v1970_v61 }
 0x8be   : > { %1552 = vadd.xlane.f32.xlu0 %v1551_v56 }
 0x8c1   : > { %1567 = vadd.xlane.f32.xlu1 %v1566_v32 }
 0x8c2   : > { %1962 = vadd.xlane.f32.xlu0 %v1961_v58 }
 0x8c5   : > { %1977 = vadd.xlane.f32.xlu1 %v1976_v55 }
 0x8c6   : > { %1558 = vadd.xlane.f32.xlu0 %v1557_v45 }
 0x8ca   : > { %1968 = vadd.xlane.f32.xlu0 %v1967_v0 }
 0x8ce   : > { %1564 = vadd.xlane.f32.xlu0 %v1563_v24 }
 0x8d2   : > { %1974 = vadd.xlane.f32.xlu0 %v1973_v4 }
 0x8f4   : > { %v2322_v6 = vpop.xlane.xlu1 %2321 }
 0x8f5   : > { %v2342_v33 = vsub.f32 %v3434_v7, %v2322_v6 }
 0x8f6   : > { %v2319_v36 = vpop.xlane.xlu0 %2318 }
 0x8f7   : > { %v2351_v18 = vmul.f32 1.442695, %v2342_v33  ;;  %v2341_v23 = vsub.f32 %v2278_v14, %v2319_v36 }
 0x8f9   : > { %3606 = vpow2.f32 %v2351_v18  ;;  %v2349_v43 = vmul.f32 1.442695, %v2341_v23 }
 0x8fa   : > { %v2328_v47 = vpop.xlane.xlu0 %2327 }
 0x8fb   : > { %3608 = vpow2.f32 %v2349_v43  ;;  %v2344_v10 = vsub.f32 %v3437_v39, %v2328_v47 }
 0x8fd   : > { %v2355_v27 = vmul.f32 1.442695, %v2344_v10  ;;  %v2334_v16 = vpop.xlane.xlu1 %2333 }
 0x8fe   : > { %v2346_v37 = vsub.f32 %v4592_v62, %v2334_v16  ;;  %v2325_v34 = vpop.xlane.xlu0 %2324  ;;  %v1138_v16 = vsel %vm1086_vm2, %v4211_v8, 0.0  ;;  %v1141_v8 = vsel %vm1086_vm2, %v4244_v49, 0.0 }
 0x8ff   : > { %3610 = vpow2.f32 %v2355_v27  ;;  %v2343_v5 = vsub.f32 %v4589_v41, %v2325_v34  ;;  %v1144_v34 = vsel %vm1086_vm2, %v4248_v50, 0.0 }
 0x900   : > { %v2359_v1 = vmul.f32 1.442695, %v2346_v37 }
 0x901   : > { %v2353_v21 = vmul.f32 1.442695, %v2343_v5  ;;  %v2340_v61 = vpop.xlane.xlu1 %2339  ;;  %v1135_v5 = vsel %vm1086_vm2, %v4209_v46, 0.0  ;;  %v1153_v46 = vsel %vm1086_vm2, %v4263_v2, 0.0 }
 0x902   : > { %3612 = vpow2.f32 %v2359_v1  ;;  %v2348_v7 = vsub.f32 %v4600_v11, %v2340_v61  ;;  %v2331_v14 = vpop.xlane.xlu0 %2330  ;;  %v1150_v1 = vsel %vm1086_vm2, %v4257_v28, 0.0  ;;  %v1147_v61 = vsel %vm1086_vm2, %v4253_v51, 0.0 }
 0x903   : > { %3614 = vpow2.f32 %v2353_v21  ;;  %v2345_v56 = vsub.f32 %v4596_v52, %v2331_v14  ;;  %v1156_v21 = vsel %vm1086_vm2, %v4265_v3, 0.0 }
 0x904   : > { %v2363_v32 = vmul.f32 1.442695, %v2348_v7 }
 0x905   : > { %v2357_v39 = vmul.f32 1.442695, %v2345_v56  ;;  %v2390_v4 = vpop.permute.xlu1 %2389 }
 0x906   : > { %v3607_v58 = vpop.eup %3606  ;;  %3616 = vpow2.f32 %v2363_v32  ;;  %v2337_v55 = vpop.xlane.xlu0 %2336 }
 0x907   : > { %3618 = vpow2.f32 %v2357_v39  ;;  %v2347_v62 = vsub.f32 %v4606_v9, %v2337_v55  ;;  %v2368_v41 = vsel %vm1086_vm2, %v3607_v58, 0.0 }
 0x908   : > { %v3609_v45 = vpop.eup %3608  ;;  %2369 = vadd.xlane.f32.xlu1 %v2368_v41 }
 0x909   : > { %v2361_v0 = vmul.f32 1.442695, %v2347_v62  ;;  %3460 = vmatprep.mubr.msk.f32.mxu0 %vm1086_vm2, %v3609_v45  ;;  %v2365_v11 = vsel %vm1086_vm2, %v3609_v45, 0.0 }
 0x90a   : > { %2366 = vadd.xlane.f32.xlu0 %v2365_v11  ;;  %v2392_v24 = vpop.permute.xlu0 %2391 }
 0x90b   : > { %3620 = vpow2.f32 %v2361_v0  ;;  %3456 = vmatprep.subr.mxu0 %v2392_v24  ;;  %3498 = vmatprep.subr.mxu1 %v2392_v24 }
 0x90c   : > { %v3611_v52 = vpop.eup %3610  ;;  %3457 = vmatpush3.msra.mxu0 %v2392_v24  ;;  %3506 = vmatpush3.msra.mxu1 %v2392_v24 }
 0x90d   : > { %3458 = vmatprep.subr.mxu0 %v2390_v4  ;;  %3499 = vmatprep.subr.mxu1 %v2390_v4  ;;  %v2374_v9 = vsel %vm1086_vm2, %v3611_v52, 0.0 }
 0x90e   : > { %2375 = vadd.xlane.f32.xlu1 %v2374_v9  ;;  %3459 = vmatpush3.msra.mxu0 %v2390_v4 }
 0x90f   : > { %v3613_v6 = vpop.eup %3612  ;;  %3507 = vmatpush3.msra.mxu1 %v2390_v4  ;;  %3461 = vmatmul.mubr.msk.f32.vlgmr.msra.gmra.mxu0 %vm1086_vm2, %v3607_v58 }
 0x910   : > { %v3615_v33 = vpop.eup %3614  ;;  %v2380_v36 = vsel %vm1086_vm2, %v3613_v6, 0.0 }
 0x911   : > { %3463 = vmatprep.mubr.msk.f32.mxu0 %vm1086_vm2, %v3615_v33  ;;  %v2371_v18 = vsel %vm1086_vm2, %v3615_v33, 0.0 }
 0x912   : > { %2381 = vadd.xlane.f32.xlu1 %v2380_v36  ;;  %2372 = vadd.xlane.f32.xlu0 %v2371_v18 }
 0x913   : > { %v3617_v23 = vpop.eup %3616  ;;  %3464 = vmatmul.mubr.msk.f32.gmra.mxu0 %vm1086_vm2, %v3611_v52 }
 0x914   : > { %v3619_v43 = vpop.eup %3618  ;;  %v2386_v47 = vsel %vm1086_vm2, %v3617_v23, 0.0 }
 0x915   : > { %3466 = vmatprep.mubr.msk.f32.mxu1 %vm1086_vm2, %v3619_v43  ;;  %v2377_v10 = vsel %vm1086_vm2, %v3619_v43, 0.0 }
 0x916   : > { %2387 = vadd.xlane.f32.xlu1 %v2386_v47  ;;  %2378 = vadd.xlane.f32.xlu0 %v2377_v10 }
 0x917   : > { %3467 = vmatmul.mubr.msk.f32.vlgmr.msra.gmra.mxu1 %vm1086_vm2, %v3613_v6 }
 0x918   : > { %v3621_v27 = vpop.eup %3620 }
 0x919   : > { %3469 = vmatprep.mubr.msk.f32.mxu1 %vm1086_vm2, %v3621_v27  ;;  %v2383_v37 = vsel %vm1086_vm2, %v3621_v27, 0.0 }
 0x91a   : > { %1139 = vadd.xlane.f32.xlu1 %v1138_v16  ;;  %2384 = vadd.xlane.f32.xlu0 %v2383_v37 }
 0x91b   : > { %3470 = vmatmul.mubr.msk.f32.gmra.mxu1 %vm1086_vm2, %v3617_v23 }
 0x91e   : > { %1145 = vadd.xlane.f32.xlu1 %v1144_v34  ;;  %1136 = vadd.xlane.f32.xlu0 %v1135_v5 }
 0x922   : > { %1151 = vadd.xlane.f32.xlu1 %v1150_v1  ;;  %1142 = vadd.xlane.f32.xlu0 %v1141_v8 }
 0x926   : > { %1157 = vadd.xlane.f32.xlu1 %v1156_v21  ;;  %1148 = vadd.xlane.f32.xlu0 %v1147_v61 }
 0x92a   : > { %1154 = vadd.xlane.f32.xlu0 %v1153_v46 }
 0x936   : > { %v1550_v50 = vpop.xlane.xlu1 %1549 }
 0x937   : > { %3622 = vrcp.f32 %v1550_v50 }
 0x93a   : > { %v1556_v28 = vpop.xlane.xlu1 %1555 }
 0x93b   : > { %v1547_v7 = vpop.xlane.xlu0 %1546 }
 0x93c   : > { %3624 = vrcp.f32 %v1547_v7 }
 0x93e   : > { %v1966_v49 = vpop.xlane.xlu1 %1965 }
 0x93f   : > { %v1957_v14 = vpop.xlane.xlu0 %1956 }
 0x940   : > { %3626 = vrcp.f32 %v1957_v14 }
 0x942   : > { %v1562_v3 = vpop.xlane.xlu1 %1561 }
 0x943   : > { %v1960_v56 = vpop.xlane.xlu0 %1959 }
 0x944   : > { %v3623_v32 = vpop.eup %3622  ;;  %3628 = vrcp.f32 %v1960_v56 }
 0x945   : > { %v1731_v51 = vmul.f32 %v3623_v32, %v4431_v53  ;;  %3630 = vrcp.f32 %v1556_v28  ;;  %v2681_v28 = vld [vmem:[%s4809_s6 + $0x8] sm:$0xff] }
 0x946   : > { %v1972_v55 = vpop.xlane.xlu1 %1971 }
 0x947   : > { %2568 = vrot.lane.b32.xlu1 %v1731_v51, %s3709_s18  ;;  %v1553_v2 = vpop.xlane.xlu0 %1552 }
 0x948   : > { %3632 = vrcp.f32 %v1553_v2 }
 0x949   : > { %v3625_v39 = vpop.eup %3624  ;;  %3634 = vrcp.f32 %v1966_v49 }
 0x94a   : > { %v1730_v58 = vmul.f32 %v3625_v39, %v4433_v42  ;;  %v1568_v11 = vpop.xlane.xlu1 %1567 }
 0x94b   : > { %v1963_v62 = vpop.xlane.xlu0 %1962 }
 0x94c   : > { %3636 = vrcp.f32 %v1963_v62  ;;  %2566 = vrot.lane.b32.xlu0 %v1730_v58, %s3709_s18 }
 0x94d   : > { %v3627_v41 = vpop.eup %3626  ;;  %3638 = vrcp.f32 %v1562_v3 }
 0x94e   : > { %v2140_v45 = vmul.f32 %v3627_v41, %v4573_v40  ;;  %v1978_v33 = vpop.xlane.xlu1 %1977 }
 0x94f   : > { %v1559_v53 = vpop.xlane.xlu0 %1558 }
 0x950   : > { %3640 = vrcp.f32 %v1559_v53  ;;  %2598 = vrot.lane.b32.xlu1 %v2140_v45, %s3710_s19 }
 0x951   : > { %v3629_v0 = vpop.eup %3628  ;;  %3642 = vrcp.f32 %v1972_v55 }
 0x952   : > { %v2141_v24 = vmul.f32 %v3629_v0, %v4571_v20  ;;  %v3631_v42 = vpop.eup %3630 }
 0x953   : > { %v1969_v52 = vpop.xlane.xlu0 %1968  ;;  %v1733_v9 = vmul.f32 %v3631_v42, %v4435_v48 }
 0x954   : > { %3644 = vrcp.f32 %v1969_v52  ;;  %2600 = vrot.lane.b32.xlu1 %v2141_v24, %s3710_s19 }
 0x955   : > { %v3633_v4 = vpop.eup %3632  ;;  %3646 = vrcp.f32 %v1568_v11 }
 0x956   : > { %v1732_v40 = vmul.f32 %v3633_v4, %v4437_v57  ;;  %v3635_v6 = vpop.eup %3634 }
 0x957   : > { %v1565_v36 = vpop.xlane.xlu0 %1564  ;;  %v2143_v18 = vmul.f32 %v3635_v6, %v4575_v25  ;;  %v2683_v25 = vld [vmem:[%s4809_s6 + $0x18] sm:$0xff] }
 0x958   : > { %3648 = vrcp.f32 %v1565_v36  ;;  %2572 = vrot.lane.b32.xlu1 %v1733_v9, %s3709_s18  ;;  %2570 = vrot.lane.b32.xlu0 %v1732_v40, %s3709_s18 }
 0x959   : > { %v3637_v20 = vpop.eup %3636  ;;  %3650 = vrcp.f32 %v1978_v33  ;;  %3472 = vmatprep.subr.mxu0 %v2683_v25 }
 0x95a   : > { %v2142_v23 = vmul.f32 %v3637_v20, %v4577_v31  ;;  %v3639_v43 = vpop.eup %3638  ;;  %v2682_v31 = vld [vmem:[%s4809_s6 + $0x10] sm:$0xff]  ;;  %3473 = vmatpush3.msra.mxu0 %v2683_v25 }
 0x95b   : > { %v1975_v47 = vpop.xlane.xlu0 %1974  ;;  %v1735_v57 = vmul.f32 %v3639_v43, %v4439_v59  ;;  %3474 = vmatprep.subr.mxu0 %v2682_v31 }
 0x95c   : > { %3652 = vrcp.f32 %v1975_v47  ;;  %2604 = vrot.lane.b32.xlu1 %v2143_v18, %s3710_s19  ;;  %2602 = vrot.lane.b32.xlu0 %v2142_v23, %s3710_s19 }
 0x95d   : > { %v3641_v48 = vpop.eup %3640  ;;  %3475 = vmatpush3.msra.mxu0 %v2682_v31 }
 0x95e   : > { %v1734_v10 = vmul.f32 %v3641_v48, %v4441_v17  ;;  %v3643_v27 = vpop.eup %3642  ;;  %3476 = vmatprep.subr.mxu0 %v2681_v28 }
 0x95f   : > { %v2145_v37 = vmul.f32 %v3643_v27, %v4579_v63  ;;  %3477 = vmatpush3.msra.mxu0 %v2681_v28 }
 0x960   : > { %2576 = vrot.lane.b32.xlu1 %v1735_v57, %s3709_s18  ;;  %2574 = vrot.lane.b32.xlu0 %v1734_v10, %s3709_s18 }
 0x961   : > { %v3645_v16 = vpop.eup %3644 }
 0x962   : > { %v2144_v59 = vmul.f32 %v3645_v16, %v4581_v44  ;;  %v3647_v17 = vpop.eup %3646 }
 0x963   : > { %v1737_v5 = vmul.f32 %v3647_v17, %v4443_v60 }
 0x964   : > { %2608 = vrot.lane.b32.xlu1 %v2145_v37, %s3710_s19  ;;  %2606 = vrot.lane.b32.xlu0 %v2144_v59, %s3710_s19 }
 0x965   : > { %v3649_v34 = vpop.eup %3648 }
 0x966   : > { %v1736_v1 = vmul.f32 %v3649_v34, %v4445_v35  ;;  %v3651_v8 = vpop.eup %3650 }
 0x967   : > { %v2147_v44 = vmul.f32 %v3651_v8, %v4583_v29 }
 0x968   : > { %2580 = vrot.lane.b32.xlu1 %v1737_v5, %s3709_s18  ;;  %2578 = vrot.lane.b32.xlu0 %v1736_v1, %s3709_s18 }
 0x969   : > { %v3653_v63 = vpop.eup %3652 }
 0x96a   : > { %v2146_v21 = vmul.f32 %v3653_v63, %v4585_v30  ;;  %v2680_v30 = vld [vmem:[%s4809_s6] sm:$0xff] }
 0x96b   : > { %3478 = vmatprep.subr.mxu0 %v2680_v30 }
 0x96c   : > { %2612 = vrot.lane.b32.xlu1 %v2147_v44, %s3710_s19  ;;  %2610 = vrot.lane.b32.xlu0 %v2146_v21, %s3710_s19 }
 0x96d   : > { %3479 = vmatpush3.msra.mxu0 %v2680_v30 }
 0x991   : > { %v2370_v61 = vpop.xlane.xlu1 %2369 }
 0x992   : > { %3654 = vrcp.f32 %v2370_v61 }
 0x993   : > { %v2367_v46 = vpop.xlane.xlu0 %2366 }
 0x994   : > { %3656 = vrcp.f32 %v2367_v46 }
 0x997   : > { %v2376_v50 = vpop.xlane.xlu1 %2375 }
 0x998   : > { %3658 = vrcp.f32 %v2376_v50 }
 0x99b   : > { %v2373_v60 = vpop.xlane.xlu0 %2372  ;;  %v2382_v35 = vpop.xlane.xlu1 %2381 }
 0x99c   : > { %3660 = vrcp.f32 %v2373_v60 }
 0x99d   : > { %3662 = vrcp.f32 %v2382_v35 }
 0x99f   : > { %v2379_v29 = vpop.xlane.xlu0 %2378  ;;  %v2388_v7 = vpop.xlane.xlu1 %2387 }
 0x9a0   : > { %3664 = vrcp.f32 %v2379_v29  ;;  %v3655_v14 = vpop.eup %3654 }
 0x9a1   : > { %3666 = vrcp.f32 %v2388_v7  ;;  %v3657_v3 = vpop.eup %3656 }
 0x9a3   : > { %v2385_v49 = vpop.xlane.xlu0 %2384  ;;  %v1140_v20 = vpop.xlane.xlu1 %1139 }
 0x9a4   : > { %3668 = vrcp.f32 %v2385_v49 }
 0x9a5   : > { %v3659_v39 = vpop.eup %3658 }
 0x9a7   : > { %v1146_v18 = vpop.xlane.xlu1 %1145  ;;  %v1137_v43 = vpop.xlane.xlu0 %1136 }
 0x9a8   : > { %3670 = vrcp.f32 %v1137_v43 }
 0x9a9   : > { %v3661_v62 = vpop.eup %3660  ;;  %3672 = vrcp.f32 %v1140_v20 }
 0x9aa   : > { %v3663_v53 = vpop.eup %3662 }
 0x9ab   : > { %v1152_v23 = vpop.xlane.xlu1 %1151  ;;  %v1143_v48 = vpop.xlane.xlu0 %1142 }
 0x9ac   : > { %3674 = vrcp.f32 %v1143_v48 }
 0x9ad   : > { %v3665_v24 = vpop.eup %3664  ;;  %3676 = vrcp.f32 %v1146_v18 }
 0x9ae   : > { %v3667_v4 = vpop.eup %3666 }
 0x9af   : > { %v1158_v47 = vpop.xlane.xlu1 %1157  ;;  %v1149_v10 = vpop.xlane.xlu0 %1148 }
 0x9b0   : > { %3678 = vrcp.f32 %v1149_v10 }
 0x9b1   : > { %v3669_v6 = vpop.eup %3668  ;;  %3680 = vrcp.f32 %v1152_v23 }
 0x9b3   : > { %v1155_v25 = vpop.xlane.xlu0 %1154 }
 0x9b4   : > { %3682 = vrcp.f32 %v1155_v25 }
 0x9b5   : > { %v3671_v61 = vpop.eup %3670  ;;  %3684 = vrcp.f32 %v1158_v47 }
 0x9b6   : > { %v3673_v50 = vpop.eup %3672  ;;  %v1320_v35 = vmul.f32 %v3671_v61, %v4285_v12 }
 0x9b7   : > { %v1321_v29 = vmul.f32 %v3673_v50, %v4283_v38  ;;  %v3689_v50 = vld [vmem:[%s3795_s21 + $0x10] sm:$0xff] }
 0x9b9   : > { %v2569_v57 = vpop.permute.xlu1 %2568  ;;  %v3675_v28 = vpop.eup %3674 }
 0x9ba   : > { %v3677_v7 = vpop.eup %3676 }
 0x9be   : > { %v2567_v16 = vpop.permute.xlu0 %2566 }
 0x9bf   : > { %v2654_v49 = vsel %vm932_vm1, %v1320_v35, %v2567_v16 }
 0x9c2   : > { %v2599_v27 = vpop.permute.xlu1 %2598 }
 0x9c6   : > { %v2601_v31 = vpop.permute.xlu1 %2600 }
 0x9ca   : > { %v2573_v37 = vpop.permute.xlu1 %2572  ;;  %v2571_v59 = vpop.permute.xlu0 %2570 }
 0x9ce   : > { %v2605_v17 = vpop.permute.xlu1 %2604  ;;  %v2603_v34 = vpop.permute.xlu0 %2602 }
 0x9cf   : > { %v3462_v56 = vpop.f32.mrf.mxu0 }
 0x9d0   : > { %v2551_v32 = vmul.f32 %v3655_v14, %v3462_v56  ;;  %v2655_v14 = vsel %vm932_vm1, %v1321_v29, %v2569_v57  ;;  %v2663_v56 = vsel %vm2662_vm3, %v2654_v49, %v2599_v27  ;;  %v3030_v27 = vld [vmem:[%s4810_s7] ss:$0 sm:$0xff]  ;;  %v3690_v29 = vld [vmem:[%s3795_s21 + $0x28] sm:$0xff] }
 0x9d1   : > { %v2503_v51 = vpop.f32.mrf.mxu0 }
 0x9d2   : > { %v2550_v2 = vmul.f32 %v3657_v3, %v2503_v51  ;;  %2632 = vrot.lane.b32.xlu1 %v2551_v32, %s3711_s29  ;;  %v2577_v5 = vpop.permute.xlu1 %2576  ;;  %v2575_v1 = vpop.permute.xlu0 %2574  ;;  %v2664_v3 = vsel %vm2662_vm3, %v2655_v14, %v2601_v31  ;;  %v1322_v51 = vmul.f32 %v3675_v28, %v4289_v15  ;;  %v3691_v14 = vld [vmem:[%s3795_s21 + $0x20] sm:$0xff] }
 0x9d3   : > { %v3465_v58 = vpop.f32.mrf.mxu0 }
 0x9d4   : > { %v2553_v55 = vmul.f32 %v3659_v39, %v3465_v58  ;;  %2630 = vrot.lane.b32.xlu0 %v2550_v2, %s3711_s29  ;;  %v3679_v2 = vpop.eup %3678  ;;  %v1323_v39 = vmul.f32 %v3677_v7, %v4287_v13 }
 0x9d5   : > { %v2513_v41 = vpop.f32.mrf.mxu0 }
 0x9d6   : > { %v2552_v45 = vmul.f32 %v3661_v62, %v2513_v41  ;;  %2636 = vrot.lane.b32.xlu1 %v2553_v55, %s3711_s29  ;;  %v2609_v8 = vpop.permute.xlu1 %2608  ;;  %v2607_v63 = vpop.permute.xlu0 %2606  ;;  %v2656_v62 = vsel %vm932_vm1, %v1322_v51, %v2571_v59  ;;  %v2657_v41 = vsel %vm932_vm1, %v1323_v39, %v2573_v37  ;;  %v3686_v37 = vld [vmem:[%s3795_s21 + $0x8] sm:$0xff]  ;;  %v3692_v51 = vld [vmem:[%s3795_s21 + $0x38] sm:$0xff]  ;;  %v3693_v39 = vld [vmem:[%s3795_s21 + $0x30] sm:$0xff] }
 0x9d7   : > { %v3468_v0 = vpop.f32.mrf.mxu1  ;;  %v3681_v55 = vpop.eup %3680 }
 0x9d8   : > { %v2555_v11 = vmul.f32 %v3663_v53, %v3468_v0  ;;  %2634 = vrot.lane.b32.xlu0 %v2552_v45, %s3711_s29  ;;  %v2665_v45 = vsel %vm2662_vm3, %v2656_v62, %v2603_v34  ;;  %v2666_v53 = vsel %vm2662_vm3, %v2657_v41, %v2605_v17  ;;  %v1324_v0 = vmul.f32 %v3679_v2, %v4293_v54 }
 0x9d9   : > { %v2523_v42 = vpop.f32.mrf.mxu1 }
 0x9da   : > { %v2554_v52 = vmul.f32 %v3665_v24, %v2523_v42  ;;  %2640 = vrot.lane.b32.xlu1 %v2555_v11, %s3711_s29  ;;  %v2581_v44 = vpop.permute.xlu1 %2580  ;;  %v2579_v21 = vpop.permute.xlu0 %2578  ;;  %v1325_v24 = vmul.f32 %v3681_v55, %v4291_v19 }
 0x9db   : > { %v3471_v9 = vpop.f32.mrf.mxu1  ;;  %v3683_v11 = vpop.eup %3682 }
 0x9dc   : > { %v2557_v40 = vmul.f32 %v3667_v4, %v3471_v9  ;;  %2638 = vrot.lane.b32.xlu0 %v2554_v52, %s3711_s29  ;;  %v3685_v4 = vpop.eup %3684  ;;  %v2658_v9 = vsel %vm932_vm1, %v1324_v0, %v2575_v1 }
 0x9dd   : > { %v2533_v33 = vpop.f32.mrf.mxu1  ;;  %v1327_v20 = vmul.f32 %v3685_v4, %v4295_v22 }
 0x9de   : > { %v2556_v36 = vmul.f32 %v3669_v6, %v2533_v33  ;;  %2644 = vrot.lane.b32.xlu1 %v2557_v40, %s3711_s29  ;;  %v2613_v46 = vpop.permute.xlu1 %2612  ;;  %v2611_v60 = vpop.permute.xlu0 %2610  ;;  %v2659_v40 = vsel %vm932_vm1, %v1325_v24, %v2577_v5  ;;  %v2667_v6 = vsel %vm2662_vm3, %v2658_v9, %v2607_v63  ;;  %v3687_v5 = vld [vmem:[%s3795_s21] sm:$0xff] }
 0x9df   : > { %v2668_v33 = vsel %vm2662_vm3, %v2659_v40, %v2609_v8  ;;  %v2661_v47 = vsel %vm932_vm1, %v1327_v20, %v2581_v44  ;;  %v3688_v44 = vld [vmem:[%s3795_s21 + $0x18] sm:$0xff] }
 0x9e0   : > { %2642 = vrot.lane.b32.xlu0 %v2556_v36, %s3711_s29  ;;  %v1326_v36 = vmul.f32 %v3683_v11, %v4297_v26  ;;  %v2670_v57 = vsel %vm2662_vm3, %v2661_v47, %v2613_v46 }
 0x9e2   : > { %v2660_v23 = vsel %vm932_vm1, %v1326_v36, %v2579_v21 }
 0x9e3   : > { %v2669_v48 = vsel %vm2662_vm3, %v2660_v23, %v2611_v60 }
 0xa44   : > { %v2633_v30 = vpop.permute.xlu1 %2632 }
 0xa45   : > { %v2673_v38 = vsel %vm2671_vm4, %v2664_v3, %v2633_v30 }
 0xa46   : > { %v2631_v32 = vpop.permute.xlu0 %2630 }
 0xa47   : > { %v2672_v12 = vsel %vm2671_vm4, %v2663_v56, %v2631_v32 }
 0xa48   : > { %v2637_v58 = vpop.permute.xlu1 %2636  ;;  %3480 = vmatprep.mubr.msk.f32.mxu0 %vm398_vm0, %v2672_v12 }
 0xa49   : > { %3481 = vmatmul.mubr.msk.f32.vlgmr.msra.gmra.mxu0 %vm398_vm0, %v2673_v38  ;;  %v2675_v42 = vsel %vm2671_vm4, %v2666_v53, %v2637_v58 }
 0xa4a   : > { %v2635_v15 = vpop.permute.xlu0 %2634 }
 0xa4b   : > { %v2674_v13 = vsel %vm2671_vm4, %v2665_v45, %v2635_v15 }
 0xa4c   : > { %v2641_v52 = vpop.permute.xlu1 %2640  ;;  %3483 = vmatprep.mubr.msk.f32.mxu0 %vm398_vm0, %v2674_v13 }
 0xa4d   : > { %3484 = vmatmul.mubr.msk.f32.gmra.mxu0 %vm398_vm0, %v2675_v42  ;;  %v2677_v18 = vsel %vm2671_vm4, %v2668_v33, %v2641_v52 }
 0xa4e   : > { %v2639_v54 = vpop.permute.xlu0 %2638 }
 0xa4f   : > { %v2676_v19 = vsel %vm2671_vm4, %v2667_v6, %v2639_v54 }
 0xa50   : > { %3486 = vmatprep.mubr.msk.f32.mxu0 %vm398_vm0, %v2676_v19  ;;  %v2645_v43 = vpop.permute.xlu1 %2644 }
 0xa51   : > { %3487 = vmatmul.mubr.msk.f32.gmra.mxu0 %vm398_vm0, %v2677_v18  ;;  %v2679_v10 = vsel %vm2671_vm4, %v2670_v57, %v2645_v43 }
 0xa52   : > { %v2643_v26 = vpop.permute.xlu0 %2642 }
 0xa53   : > { %v2678_v22 = vsel %vm2671_vm4, %v2669_v48, %v2643_v26 }
 0xa54   : > { %3489 = vmatprep.mubr.msk.f32.mxu0 %vm398_vm0, %v2678_v22 }
 0xa55   : > { %3490 = vmatmul.mubr.msk.f32.gmra.mxu0 %vm398_vm0, %v2679_v10 }
 0xb09   : > { %v3482_v25 = vpop.f32.mrf.mxu0 }
 0xb0a   : > { %v2787_v31 = vadd.f32 %v3482_v25, %v3030_v27 }
 0xb0b   : > { %v2781_v16 = vpop.f32.mrf.mxu0 }
 0xb0c   : > { %v2821_v59 = vadd.f32 %v3686_v37, %v2787_v31  ;;  %v2782_v17 = vadd.f32 %v3030_v27, %v2781_v16 }
 0xb0d   : > { %v3485_v34 = vpop.f32.mrf.mxu0 }
 0xb0e   : > { %2829 = vst.msk [vmem:[%s4774_s16 + $0x8] sm:$0xff] %vm398_vm0, %v2821_v59  ;;  %v2820_v1 = vadd.f32 %v3687_v5, %v2782_v17  ;;  %v2797_v8 = vadd.f32 %v3485_v34, %v3030_v27 }
 0xb0f   : > { %v2791_v63 = vpop.f32.mrf.mxu0 }
 0xb10   : > { %2828 = vst.msk [vmem:[%s4774_s16] sm:$0xff] %vm398_vm0, %v2820_v1  ;;  %v2823_v21 = vadd.f32 %v3688_v44, %v2797_v8  ;;  %v2792_v61 = vadd.f32 %v3030_v27, %v2791_v63 }
 0xb11   : > { %v3488_v46 = vpop.f32.mrf.mxu0 }
 0xb12   : > { %2831 = vst.msk [vmem:[%s4774_s16 + $0x18] sm:$0xff] %vm398_vm0, %v2823_v21  ;;  %v2822_v60 = vadd.f32 %v3689_v50, %v2792_v61  ;;  %v2807_v35 = vadd.f32 %v3488_v46, %v3030_v27 }
 0xb13   : > { %v2801_v28 = vpop.f32.mrf.mxu0 }
 0xb14   : > { %2830 = vst.msk [vmem:[%s4774_s16 + $0x10] sm:$0xff] %vm398_vm0, %v2822_v60  ;;  %v2825_v30 = vadd.f32 %v3690_v29, %v2807_v35  ;;  %v2802_v7 = vadd.f32 %v3030_v27, %v2801_v28 }
 0xb15   : > { %v3491_v49 = vpop.f32.mrf.mxu0 }
 0xb16   : > { %2833 = vst.msk [vmem:[%s4774_s16 + $0x28] sm:$0xff] %vm398_vm0, %v2825_v30  ;;  %v2824_v56 = vadd.f32 %v3691_v14, %v2802_v7  ;;  %v2817_v32 = vadd.f32 %v3491_v49, %v3030_v27 }
 0xb17   : > { %v2811_v3 = vpop.f32.mrf.mxu0 }
 0xb18   : > { %2832 = vst.msk [vmem:[%s4774_s16 + $0x20] sm:$0xff] %vm398_vm0, %v2824_v56  ;;  %v2827_v12 = vadd.f32 %v3692_v51, %v2817_v32  ;;  %v2812_v2 = vadd.f32 %v3030_v27, %v2811_v3 }
 0xb1a   : > { %2835 = vst.msk [vmem:[%s4774_s16 + $0x38] sm:$0xff] %vm398_vm0, %v2827_v12  ;;  %v2826_v38 = vadd.f32 %v3693_v39, %v2812_v2 }
 0xb1c   : > { %2834 = vst.msk [vmem:[%s4774_s16 + $0x30] sm:$0xff] %vm398_vm0, %v2826_v38 }
 0xb1d PF: > { %s20_s13 = sadd.s32 1, %s3700_s13  }
 0xb1e   : > { %p17_p4 = scmp.ge.s32.totalorder %s20_s13, 4  }
 0xb20   :  { %19 = sbr.rel (!%p17_p4) target bundleno = 1 (0x1), region = 93 }

</bundles_post_ra>
